<compile_context>
chip_gen: v6e
topology: v6e:2x2x1
jax: 0.10.0
libtpu: 0.0.40
codegen_flags: <defaults>
</compile_context>

<pallas_src>
import functools

import jax
import jax.numpy as jnp
from jax import lax
from jax.experimental import pallas as pl
from jax.experimental.pallas import tpu as pltpu

ACT_DTYPE = jnp.bfloat16          # activations / weights fed to the MXU (f32 accumulation)
_VMEM_LIMIT = 48 * 1024 * 1024    # raised scoped-VMEM limit (defaults are 16-32 MiB)


def _round16(w):
    """Pad width so row tiles stay layout-preserving for bf16 (16,128) reshapes."""
    return ((w + 15) // 16) * 16


def _pick_rows(h, cout=None):
    """Output rows per grid step (must divide H).  Prefer big tiles (amortize ~0.35us
    per-step overhead), but keep >=2 grid steps when reasonable so v7x's second core
    gets work.  Tiny-Cout heads keep small tiles (their blocks pad Cout to 128 lanes)."""
    cands = (8, 4, 2, 1) if (cout is not None and cout < 8) else (40, 32, 20, 16, 10, 8, 5, 4, 2, 1)
    for c in cands:
        if c >= 4 and h % c == 0 and h // c >= 2:
            return c
    for c in cands:
        if h % c == 0:
            return c
    return h


# ----------------------------------------------------------------------------
# Pallas kernels
# ----------------------------------------------------------------------------

@functools.lru_cache(maxsize=None)
def _conv3x3_call(N, H, We, Cin, Cout, rows, relu, with_res, out_f32):
    """Row-tiled 3x3 'same' conv (stride 1) with fused bias, optional ReLU and optional
    fused (residual-add -> ReLU).  The padded input (N, H+2, We+2, Cin) stays resident
    in VMEM (index_map is constant over the row axis, so it is DMA'd once per batch
    element); the kernel reads the nine taps itself and folds dy into K = 3*Cin."""
    K = 3 * Cin
    out_dtype = jnp.float32 if out_f32 else ACT_DTYPE

    def kernel(x_ref, w_ref, b_ref, *rest):
        if with_res:
            res_ref, out_ref = rest
        else:
            (out_ref,) = rest
        r0 = pl.program_id(1) * rows
        acc = jnp.zeros((rows * We, Cout), jnp.float32)
        for dx in range(3):                                   # dx taps: shifted sublane reads
            lhs = jnp.concatenate(                            # dy taps folded into K (lane concat)
                [x_ref[0, pl.ds(r0 + dy, rows), dx:dx + We, :] for dy in range(3)],
                axis=-1).reshape(rows * We, K)
            acc = acc + jnp.dot(lhs, w_ref[dx], preferred_element_type=jnp.float32)
        y = acc + b_ref[...]                                  # folded BN / conv bias
        if relu:
            y = jnp.maximum(y, 0.0)
        y = y.reshape(rows, We, Cout)
        if with_res:                                          # out += shortcut; relu
            y = jnp.maximum(y + res_ref[0].astype(jnp.float32), 0.0)
        out_ref[0] = y.astype(out_dtype)

    in_specs = [
        pl.BlockSpec((1, H + 2, We + 2, Cin), lambda n, h: (n, 0, 0, 0)),   # resident
        pl.BlockSpec((3, K, Cout), lambda n, h: (0, 0, 0)),
        pl.BlockSpec((1, Cout), lambda n, h: (0, 0)),
    ]
    if with_res:
        in_specs.append(pl.BlockSpec((1, rows, We, Cout), lambda n, h: (n, h, 0, 0)))

    return pl.pallas_call(
        kernel,
        grid=(N, H // rows),
        in_specs=in_specs,
        out_specs=pl.BlockSpec((1, rows, We, Cout), lambda n, h: (n, h, 0, 0)),
        out_shape=jax.ShapeDtypeStruct((N, H, We, Cout), out_dtype),
        compiler_params=pltpu.CompilerParams(
            dimension_semantics=("parallel", "parallel"),
            vmem_limit_bytes=_VMEM_LIMIT),
    )


def conv3x3(x, w, scale, bias, *, relu, residual=None, out_f32=False):
    """x: (N,H,W,Cin) NHWC; w: (3,3,Cin,Cout) HWIO; scale/bias: (Cout,). Stride 1, pad 1."""
    N, H, W, Cin = x.shape
    Cout = w.shape[-1]
    if Cin < 8:                       # stem conv: pad RGB channels to a sublane-friendly 8
        x = jnp.pad(x, ((0, 0), (0, 0), (0, 0), (0, 8 - Cin)))
        w = jnp.pad(w, ((0, 0), (0, 0), (0, 8 - Cin), (0, 0)))
        Cin = 8
    We = _round16(W)
    wf = (w * scale.reshape(1, 1, 1, Cout)).astype(ACT_DTYPE)     # fold BN scale
    w_cat = jnp.transpose(wf, (1, 0, 2, 3)).reshape(3, 3 * Cin, Cout)   # [dx][dy*Cin+ci, co]
    xp = jnp.pad(x.astype(ACT_DTYPE), ((0, 0), (1, 1), (1, 1 + We - W), (0, 0)))
    rows = _pick_rows(H, Cout)
    fn = _conv3x3_call(N, H, We, Cin, Cout, rows, bool(relu), residual is not None, bool(out_f32))
    args = [xp, w_cat, bias.reshape(1, Cout).astype(jnp.float32)]
    if residual is not None:
        res = residual.astype(ACT_DTYPE)
        if We != W:
            res = jnp.pad(res, ((0, 0), (0, 0), (0, We - W), (0, 0)))
        args.append(res)
    out = fn(*args)
    return out if We == W else out[:, :, :W, :]


@functools.lru_cache(maxsize=None)
def _fused_block_call(N, H, W, C, rows):
    """Whole stride-1 identity ResidualBlock in one pallas_call:
    conv1->bn1->relu is computed for a (rows+2)-row halo into a VMEM scratch (never hits
    HBM); conv2->bn2->relu, identity shortcut add and the final ReLU are fused on top.
    Rows/cols outside the real image are zeroed with iota masks so tile halos and the
    width-alignment padding stay exact."""
    We = _round16(W)
    Wh = We + 16          # conv1-stage width: multiple of 16 keeps bf16 reshapes layout-preserving
    K = 3 * C

    def kernel(x_ref, w1_ref, b1_ref, w2_ref, b2_ref, out_ref, h_scr):
        r0 = pl.program_id(1) * rows
        # ---- conv1 + bn1 + relu over the halo rows (padded-h coordinates) ----
        acc1 = jnp.zeros(((rows + 2) * Wh, C), jnp.float32)
        for dx in range(3):
            lhs = jnp.concatenate(
                [x_ref[0, pl.ds(r0 + dy, rows + 2), dx:dx + Wh, :] for dy in range(3)],
                axis=-1).reshape((rows + 2) * Wh, K)
            acc1 = acc1 + jnp.dot(lhs, w1_ref[dx], preferred_element_type=jnp.float32)
        h = jnp.maximum(acc1 + b1_ref[...], 0.0).reshape(rows + 2, Wh, C)
        gi = lax.broadcasted_iota(jnp.int32, (rows + 2, Wh), 0) + r0   # padded-h row index
        qi = lax.broadcasted_iota(jnp.int32, (rows + 2, Wh), 1)        # padded-h col index
        valid = (gi >= 1) & (gi <= H) & (qi >= 1) & (qi <= W)
        h_scr[...] = jnp.where(valid[:, :, None], h, 0.0).astype(h_scr.dtype)
        # ---- conv2 + bn2 + relu, then identity shortcut add + relu ----
        acc2 = jnp.zeros((rows * We, C), jnp.float32)
        for dx in range(3):
            lhs = jnp.concatenate(
                [h_scr[dy:dy + rows, dx:dx + We, :] for dy in range(3)],
                axis=-1).reshape(rows * We, K)
            acc2 = acc2 + jnp.dot(lhs, w2_ref[dx], preferred_element_type=jnp.float32)
        y = jnp.maximum(acc2 + b2_ref[...], 0.0).reshape(rows, We, C)
        sc = x_ref[0, pl.ds(r0 + 2, rows), 2:2 + We, :].astype(jnp.float32)
        out_ref[0] = jnp.maximum(y + sc, 0.0).astype(out_ref.dtype)

    return pl.pallas_call(
        kernel,
        grid=(N, H // rows),
        in_specs=[
            pl.BlockSpec((1, H + 4, Wh + 2, C), lambda n, h: (n, 0, 0, 0)),   # resident
            pl.BlockSpec((3, K, C), lambda n, h: (0, 0, 0)),
            pl.BlockSpec((1, C), lambda n, h: (0, 0)),
            pl.BlockSpec((3, K, C), lambda n, h: (0, 0, 0)),
            pl.BlockSpec((1, C), lambda n, h: (0, 0)),
        ],
        out_specs=pl.BlockSpec((1, rows, We, C), lambda n, h: (n, h, 0, 0)),
        out_shape=jax.ShapeDtypeStruct((N, H, We, C), ACT_DTYPE),
        scratch_shapes=[pltpu.VMEM((rows + 2, Wh, C), ACT_DTYPE)],
        compiler_params=pltpu.CompilerParams(
            dimension_semantics=("parallel", "parallel"),
            vmem_limit_bytes=_VMEM_LIMIT),
    )


def fused_resblock(x, p):
    """Stride-1, identity-shortcut ResidualBlock (BN folded, eval mode)."""
    N, H, W, C = x.shape
    We = _round16(W)
    w1 = (p["w1"] * p["s1"].reshape(1, 1, 1, C)).astype(ACT_DTYPE)
    w1c = jnp.transpose(w1, (1, 0, 2, 3)).reshape(3, 3 * C, C)
    w2 = (p["w2"] * p["s2"].reshape(1, 1, 1, C)).astype(ACT_DTYPE)
    w2c = jnp.transpose(w2, (1, 0, 2, 3)).reshape(3, 3 * C, C)
    # pad by 2 each side in H; 2 left / (We+16-W) right in W -> total width We+18.
    xpp = jnp.pad(x.astype(ACT_DTYPE), ((0, 0), (2, 2), (2, We + 16 - W), (0, 0)))
    rows = _pick_rows(H)
    out = _fused_block_call(N, H, W, C, rows)(
        xpp, w1c, p["t1"].reshape(1, C).astype(jnp.float32),
        w2c, p["t2"].reshape(1, C).astype(jnp.float32))
    return out if We == W else out[:, :, :W, :]


@functools.lru_cache(maxsize=None)
def _pointwise_call(N, M, Cin, Cout):
    """1x1 conv (+ folded BN) as one (M, Cin) @ (Cin, Cout) matmul over flattened pixels."""
    def kernel(x_ref, w_ref, b_ref, o_ref):
        y = jnp.dot(x_ref[0], w_ref[...], preferred_element_type=jnp.float32) + b_ref[...]
        o_ref[0] = y.astype(o_ref.dtype)

    return pl.pallas_call(
        kernel,
        grid=(N,),
        in_specs=[pl.BlockSpec((1, M, Cin), lambda n: (n, 0, 0)),
                  pl.BlockSpec((Cin, Cout), lambda n: (0, 0)),
                  pl.BlockSpec((1, Cout), lambda n: (0, 0))],
        out_specs=pl.BlockSpec((1, M, Cout), lambda n: (n, 0, 0)),
        out_shape=jax.ShapeDtypeStruct((N, M, Cout), ACT_DTYPE),
        compiler_params=pltpu.CompilerParams(
            dimension_semantics=("parallel",),
            vmem_limit_bytes=_VMEM_LIMIT),
    )


def pointwise_conv(x, w, scale, bias):
    N, H, W, Cin = x.shape
    Cout = w.shape[-1]
    wf = (w * scale.reshape(1, Cout)).astype(ACT_DTYPE)
    out = _pointwise_call(N, H * W, Cin, Cout)(
        x.astype(ACT_DTYPE).reshape(N, H * W, Cin), wf,
        bias.reshape(1, Cout).astype(jnp.float32))
    return out.reshape(N, H, W, Cout)


@functools.lru_cache(maxsize=None)
def _maxpool_call(N, Ho, Wo, C, rows):
    """2x2/stride-2 max pool.  The wrapper bit-reshapes x to (N, Ho, 2, Wo, 2C) so the
    row pair sits on an untiled dim and the column pair sits inside the lane (channel)
    dim -> the pool reads its input exactly once."""
    def kernel(x_ref, o_ref):
        v = x_ref[0]                                   # (rows, 2, Wo, 2*C)
        m = jnp.maximum(v[:, 0], v[:, 1])              # row pair max
        o_ref[0] = jnp.maximum(m[:, :, :C], m[:, :, C:])   # column pair max

    return pl.pallas_call(
        kernel,
        grid=(N, Ho // rows),
        in_specs=[pl.BlockSpec((1, rows, 2, Wo, 2 * C), lambda n, h: (n, h, 0, 0, 0))],
        out_specs=pl.BlockSpec((1, rows, Wo, C), lambda n, h: (n, h, 0, 0)),
        out_shape=jax.ShapeDtypeStruct((N, Ho, Wo, C), ACT_DTYPE),
        compiler_params=pltpu.CompilerParams(
            dimension_semantics=("parallel", "parallel"),
            vmem_limit_bytes=_VMEM_LIMIT),
    )


def maxpool2x2(x):
    N, H, W, C = x.shape
    Ho, Wo = H // 2, W // 2
    xr = x.astype(ACT_DTYPE).reshape(N, Ho, 2, Wo, 2 * C)   # pure bitcast reshape
    return _maxpool_call(N, Ho, Wo, C, _pick_rows(Ho))(xr)


@functools.lru_cache(maxsize=None)
def _linear_call(N, K, M):
    def kernel(x_ref, w_ref, b_ref, o_ref):
        o_ref[...] = jnp.dot(x_ref[...], w_ref[...],
                             preferred_element_type=jnp.float32) + b_ref[...]

    return pl.pallas_call(
        kernel,
        grid=(1,),
        in_specs=[pl.BlockSpec((N, K), lambda i: (0, 0)),
                  pl.BlockSpec((K, M), lambda i: (0, 0)),
                  pl.BlockSpec((1, M), lambda i: (0, 0))],
        out_specs=pl.BlockSpec((N, M), lambda i: (0, 0)),
        out_shape=jax.ShapeDtypeStruct((N, M), jnp.float32),
        compiler_params=pltpu.CompilerParams(vmem_limit_bytes=_VMEM_LIMIT),
    )


def linear(x, w, b):
    N, K = x.shape
    M = w.shape[-1]
    # bf16 operands, f32 accumulation (MXU native).
    return _linear_call(N, K, M)(x.astype(ACT_DTYPE), w.astype(ACT_DTYPE),
                                 b.reshape(1, M).astype(jnp.float32))


# ----------------------------------------------------------------------------
# Parameter construction (deterministic, synthetic; BN in eval-mode default state)
# ----------------------------------------------------------------------------

_BN_EPS = 1e-5


def _bn_fold(c):
    gamma = jnp.ones((c,), jnp.float32)
    beta = jnp.zeros((c,), jnp.float32)
    mean = jnp.zeros((c,), jnp.float32)
    var = jnp.ones((c,), jnp.float32)
    s = gamma / jnp.sqrt(var + _BN_EPS)
    t = beta - mean * s
    return s, t


def _conv_w(key, cin, cout, k=3):
    fan_in = k * k * cin
    return jax.random.normal(key, (k, k, cin, cout), jnp.float32) * jnp.sqrt(2.0 / fan_in)


def _make_block(key, cin, cout, stride):
    k1, k2, k3 = jax.random.split(key, 3)
    s1, t1 = _bn_fold(cout)
    s2, t2 = _bn_fold(cout)
    p = {"w1": _conv_w(k1, cin, cout), "s1": s1, "t1": t1,
         "w2": _conv_w(k2, cout, cout), "s2": s2, "t2": t2,
         "wsc": None}
    if stride != 1 or cin != cout:
        ssc, tsc = _bn_fold(cout)
        p["wsc"] = jax.random.normal(k3, (cin, cout), jnp.float32) * jnp.sqrt(1.0 / cin)
        p["ssc"] = ssc
        p["tsc"] = tsc
    return p


def _make_blocks(key, cin, cout, n, shrink_first):
    keys = jax.random.split(key, max(n, 1))
    blocks = []
    for i in range(n):
        stride = 2 if (shrink_first and i == 0) else 1
        blocks.append(_make_block(keys[i], cin, cout, stride))
        cin = cout
    return blocks


def init_params(key,
                num_residual_blocks1=2, num_residual_blocks2=12,
                num_residual_blocks3=5, num_residual_blocks_branch2=6):
    fcnt = 32
    keys = jax.random.split(key, 15)
    s1, t1 = _bn_fold(fcnt)
    return {
        "conv1_w": _conv_w(keys[0], 3, fcnt), "conv1_s": s1, "conv1_t": t1,
        "res_blocks1": _make_blocks(keys[1], fcnt, fcnt, num_residual_blocks1, False),
        "res_blocks2": _make_blocks(keys[2], fcnt, fcnt, num_residual_blocks2, False),
        "conv_seg_w": _conv_w(keys[3], fcnt, 1),
        "conv_seg_b": jax.random.normal(keys[4], (1,), jnp.float32) * 0.01,
        "conv1_1_w": _conv_w(keys[5], fcnt, fcnt),
        "conv1_1_b": jax.random.normal(keys[6], (fcnt,), jnp.float32) * 0.01,
        "res_blocks3": _make_blocks(keys[7], fcnt, fcnt, num_residual_blocks3, False),
        "conv_coord_w": _conv_w(keys[8], fcnt, 2),
        "conv_coord_b": jax.random.normal(keys[9], (2,), jnp.float32) * 0.01,
        "res_blocks2_1": _make_blocks(keys[10], fcnt, fcnt, num_residual_blocks_branch2 // 3, True),
        "res_blocks2_2": _make_blocks(keys[11], fcnt, fcnt * 2, num_residual_blocks_branch2 // 3, True),
        "res_blocks2_3": _make_blocks(keys[12], fcnt * 2, fcnt * 4, num_residual_blocks_branch2 // 3, True),
        "fc1_w": jax.random.normal(keys[13], (5 * 7 * fcnt * 4, 7 * 6), jnp.float32)
                 * jnp.sqrt(1.0 / (5 * 7 * fcnt * 4)),
        "fc1_b": jax.random.normal(keys[14], (7 * 6,), jnp.float32) * 0.01,
    }


# ----------------------------------------------------------------------------
# Forward pass (single jax.jit over the whole network)
# ----------------------------------------------------------------------------

def residual_block(x, p, stride):
    if stride == 1 and p["wsc"] is None:
        # Identity block: fully fused (conv1+bn1+relu+conv2+bn2+relu+add+relu) kernel.
        return fused_resblock(x, p)
    # Downsampling / projection block (small maps only).
    # TODO(synk): the stride-2 conv is computed at full resolution and decimated, and the
    # projection shortcut is a separate pointwise call; fuse these too if they ever matter.
    h = conv3x3(x, p["w1"], p["s1"], p["t1"], relu=True)
    if stride == 2:
        h = h[:, ::2, ::2, :]
    xs = x[:, ::2, ::2, :] if stride == 2 else x
    sc = pointwise_conv(xs, p["wsc"], p["ssc"], p["tsc"]) if p["wsc"] is not None else xs
    return conv3x3(h, p["w2"], p["s2"], p["t2"], relu=True, residual=sc)


def _run_blocks(x, blocks, shrink_first):
    for i, bp in enumerate(blocks):
        x = residual_block(x, bp, 2 if (shrink_first and i == 0) else 1)
    return x


@jax.jit
def forward(x_nchw, params):
    fcnt = 32
    x = jnp.transpose(x_nchw, (0, 2, 3, 1))                         # NCHW -> NHWC

    out = conv3x3(x, params["conv1_w"], params["conv1_s"], params["conv1_t"], relu=True)
    out = _run_blocks(out, params["res_blocks1"], False)

    # TODO(synk): conv_seg / conv_coord (Cout 1/2) still store at 1-2/128 lane density; a
    # lane-dense (W-on-lanes) head output layout is the remaining store-side optimization.
    segmentation = conv3x3(out, params["conv_seg_w"], jnp.ones((1,), jnp.float32),
                           params["conv_seg_b"], relu=False, out_f32=True)

    out = maxpool2x2(out)                                            # mid_pool1
    out = _run_blocks(out, params["res_blocks2"], False)

    t = conv3x3(out, params["conv1_1_w"], jnp.ones((fcnt,), jnp.float32),
                params["conv1_1_b"], relu=True)
    branching_out = maxpool2x2(t)                                    # pool1

    out = _run_blocks(branching_out, params["res_blocks3"], False)
    coords = conv3x3(out, params["conv_coord_w"], jnp.ones((2,), jnp.float32),
                     params["conv_coord_b"], relu=False, out_f32=True)

    b2 = _run_blocks(branching_out, params["res_blocks2_1"], True)
    probe1 = b2
    b2 = _run_blocks(b2, params["res_blocks2_2"], True)
    b2 = _run_blocks(b2, params["res_blocks2_3"], True)

    # nn.Flatten on an NCHW tensor -> flatten in (C, H, W) order; dropout = identity (eval).
    b2_nchw = jnp.transpose(b2, (0, 3, 1, 2))
    flat = b2_nchw.reshape(b2_nchw.shape[0], -1)
    area_occupancy = linear(flat, params["fc1_w"], params["fc1_b"])

    # Return PyTorch-style NCHW tensors (f32).
    return (jnp.transpose(segmentation, (0, 3, 1, 2)),
            jnp.transpose(coords, (0, 3, 1, 2)),
            area_occupancy,
            jnp.transpose(probe1, (0, 3, 1, 2)).astype(jnp.float32))


# ----------------------------------------------------------------------------
# Self-check (pure-JAX reference) + demo
# ----------------------------------------------------------------------------

def _bf(a):
    return a.astype(jnp.bfloat16).astype(jnp.float32)


def _ref_conv(x, w, b):
    y = lax.conv_general_dilated(
        x, w, (1, 1), "SAME", dimension_numbers=("NHWC", "HWIO", "NHWC"),
        precision=lax.Precision.HIGHEST)
    return y + b


def _self_check(key):
    """Tolerance-check the conv kernels against XLA references on small shapes that
    exercise multi-tile halos and the width-alignment padding (W=28 -> We=32)."""
    k1, k2, k3, k4, k5, k6, k7 = jax.random.split(key, 7)
    # standalone conv (also covers the Cin<8 channel-padding path of the stem conv)
    x = _bf(jax.random.normal(k1, (1, 16, 28, 3), jnp.float32))
    w = _bf(jax.random.normal(k2, (3, 3, 3, 32), jnp.float32) * 0.2)
    b = jax.random.normal(k3, (32,), jnp.float32) * 0.1
    got = conv3x3(x, w, jnp.ones((32,), jnp.float32), b, relu=True, out_f32=True)
    ref = jnp.maximum(_ref_conv(x, w, b), 0.0)
    err = float(jnp.max(jnp.abs(got - ref)))
    assert err < 2e-2, f"conv3x3 mismatch: max abs err {err}"
    # fused identity residual block
    C = 32
    x = _bf(jax.random.normal(k4, (1, 16, 28, C), jnp.float32))
    p = {"w1": _bf(jax.random.normal(k5, (3, 3, C, C), jnp.float32) * 0.05),
         "s1": jnp.ones((C,), jnp.float32),
         "t1": jax.random.normal(k6, (C,), jnp.float32) * 0.1,
         "w2": _bf(jax.random.normal(k7, (3, 3, C, C), jnp.float32) * 0.05),
         "s2": jnp.ones((C,), jnp.float32),
         "t2": jnp.zeros((C,), jnp.float32),
         "wsc": None}
    got = fused_resblock(x, p).astype(jnp.float32)
    h = _bf(jnp.maximum(_ref_conv(x, p["w1"], p["t1"]), 0.0))
    y = jnp.maximum(_ref_conv(h, p["w2"], p["t2"]), 0.0)
    ref = jnp.maximum(y + x, 0.0)
    err = float(jnp.max(jnp.abs(got - ref)))
    assert err < 5e-2, f"fused residual block mismatch: max abs err {err}"


if __name__ == "__main__":
    key = jax.random.PRNGKey(0)
    kc, kp, kx = jax.random.split(key, 3)

    _self_check(kc)

    # Spatial size (160, 224) is forced by fc1 = Linear(5*7*128, 42): 160/32=5, 224/32=7.
    # Block counts are reduced (valid constructor args) to keep the demo small/fast.
    params = init_params(kp,
                         num_residual_blocks1=1, num_residual_blocks2=2,
                         num_residual_blocks3=1, num_residual_blocks_branch2=3)

    x = jax.random.normal(kx, (1, 3, 160, 224), jnp.float32)

    seg, coords, area, probe1 = forward(x, params)
    jax.block_until_ready((seg, coords, area, probe1))

    assert seg.shape == (1, 1, 160, 224)
    assert coords.shape == (1, 2, 40, 56)
    assert area.shape == (1, 42)
    assert probe1.shape == (1, 32, 20, 28)
    assert all(bool(jnp.isfinite(t).all()) for t in (seg, coords, area, probe1))

    print("KERNEL_OK")
</pallas_src>

<mosaic_0001>
module attributes {stable_mosaic.version = 11 : i64} {
  func.func @kernel(%arg0: i32, %arg1: i32, %arg2: memref<1x18x34x8xbf16, #tpu.memory_space<vmem>>, %arg3: memref<3x24x32xbf16, #tpu.memory_space<vmem>>, %arg4: memref<1x32xf32, #tpu.memory_space<vmem>>, %arg5: memref<1x8x32x32xf32, #tpu.memory_space<vmem>>) attributes {dimension_semantics = [#tpu.dimension_semantics<parallel>, #tpu.dimension_semantics<parallel>], iteration_bounds = array<i64: 1, 2>, scalar_prefetch = 0 : i64, scratch_operands = 0 : i64, tpu.core_type = #tpu.core_type<tc>, window_params = [{transform_indices = @transform_0, window_bounds = array<i64: 1, 18, 34, 8>}, {pipeline_mode = #tpu.pipeline_mode<synchronous>, transform_indices = @transform_1, window_bounds = array<i64: 3, 24, 32>}, {pipeline_mode = #tpu.pipeline_mode<synchronous>, transform_indices = @transform_2, window_bounds = array<i64: 1, 32>}, {transform_indices = @transform_3, window_bounds = array<i64: 1, 8, 32, 32>}]} {
    %c8_i32 = arith.constant 8 : i32
    %0 = arith.muli %arg1, %c8_i32 : i32
    %cst = arith.constant 0.000000e+00 : f32
    %1 = vector.broadcast %cst : f32 to vector<256x32xf32>
    %c0_i32 = arith.constant 0 : i32
    %2 = arith.addi %0, %c0_i32 : i32
    %c0 = arith.constant 0 : index
    %3 = arith.index_cast %2 : i32 to index
    %c0_0 = arith.constant 0 : index
    %c0_1 = arith.constant 0 : index
    %4 = vector.load %arg2[%c0, %3, %c0_0, %c0_1] : memref<1x18x34x8xbf16, #tpu.memory_space<vmem>>, vector<1x8x32x8xbf16>
    %5 = vector.shape_cast %4 : vector<1x8x32x8xbf16> to vector<8x32x8xbf16>
    %c1_i32 = arith.constant 1 : i32
    %6 = arith.addi %0, %c1_i32 : i32
    %c0_2 = arith.constant 0 : index
    %7 = arith.index_cast %6 : i32 to index
    %c0_3 = arith.constant 0 : index
    %c0_4 = arith.constant 0 : index
    %8 = vector.load %arg2[%c0_2, %7, %c0_3, %c0_4] : memref<1x18x34x8xbf16, #tpu.memory_space<vmem>>, vector<1x8x32x8xbf16>
    %9 = vector.shape_cast %8 : vector<1x8x32x8xbf16> to vector<8x32x8xbf16>
    %c2_i32 = arith.constant 2 : i32
    %10 = arith.addi %0, %c2_i32 : i32
    %c0_5 = arith.constant 0 : index
    %11 = arith.index_cast %10 : i32 to index
    %c0_6 = arith.constant 0 : index
    %c0_7 = arith.constant 0 : index
    %12 = vector.load %arg2[%c0_5, %11, %c0_6, %c0_7] : memref<1x18x34x8xbf16, #tpu.memory_space<vmem>>, vector<1x8x32x8xbf16>
    %13 = vector.shape_cast %12 : vector<1x8x32x8xbf16> to vector<8x32x8xbf16>
    %14 = tpu.concatenate %5, %9, %13 in 2 : vector<8x32x8xbf16>, vector<8x32x8xbf16>, vector<8x32x8xbf16> -> vector<8x32x24xbf16>
    %15 = vector.shape_cast %14 : vector<8x32x24xbf16> to vector<256x24xbf16>
    %c0_8 = arith.constant 0 : index
    %c0_9 = arith.constant 0 : index
    %c0_10 = arith.constant 0 : index
    %16 = vector.load %arg3[%c0_8, %c0_9, %c0_10] : memref<3x24x32xbf16, #tpu.memory_space<vmem>>, vector<1x24x32xbf16>
    %17 = vector.shape_cast %16 : vector<1x24x32xbf16> to vector<24x32xbf16>
    %cst_11 = arith.constant dense<0.000000e+00> : vector<256x32xf32>
    %18 = tpu.matmul %15, %17, %cst_11 {dimension_numbers = #tpu.dot_dimension_numbers<[1], [0], [0], [1], [0, 0, 1, 1], [], []>} : vector<256x24xbf16>, vector<24x32xbf16>, vector<256x32xf32> -> vector<256x32xf32>
    %19 = arith.addf %1, %18 : vector<256x32xf32>
    %c0_i32_12 = arith.constant 0 : i32
    %20 = arith.addi %0, %c0_i32_12 : i32
    %c0_13 = arith.constant 0 : index
    %21 = arith.index_cast %20 : i32 to index
    %c1 = arith.constant 1 : index
    %c0_14 = arith.constant 0 : index
    %22 = vector.load %arg2[%c0_13, %21, %c1, %c0_14] : memref<1x18x34x8xbf16, #tpu.memory_space<vmem>>, vector<1x8x32x8xbf16>
    %23 = vector.shape_cast %22 : vector<1x8x32x8xbf16> to vector<8x32x8xbf16>
    %c1_i32_15 = arith.constant 1 : i32
    %24 = arith.addi %0, %c1_i32_15 : i32
    %c0_16 = arith.constant 0 : index
    %25 = arith.index_cast %24 : i32 to index
    %c1_17 = arith.constant 1 : index
    %c0_18 = arith.constant 0 : index
    %26 = vector.load %arg2[%c0_16, %25, %c1_17, %c0_18] : memref<1x18x34x8xbf16, #tpu.memory_space<vmem>>, vector<1x8x32x8xbf16>
    %27 = vector.shape_cast %26 : vector<1x8x32x8xbf16> to vector<8x32x8xbf16>
    %c2_i32_19 = arith.constant 2 : i32
    %28 = arith.addi %0, %c2_i32_19 : i32
    %c0_20 = arith.constant 0 : index
    %29 = arith.index_cast %28 : i32 to index
    %c1_21 = arith.constant 1 : index
    %c0_22 = arith.constant 0 : index
    %30 = vector.load %arg2[%c0_20, %29, %c1_21, %c0_22] : memref<1x18x34x8xbf16, #tpu.memory_space<vmem>>, vector<1x8x32x8xbf16>
    %31 = vector.shape_cast %30 : vector<1x8x32x8xbf16> to vector<8x32x8xbf16>
    %32 = tpu.concatenate %23, %27, %31 in 2 : vector<8x32x8xbf16>, vector<8x32x8xbf16>, vector<8x32x8xbf16> -> vector<8x32x24xbf16>
    %33 = vector.shape_cast %32 : vector<8x32x24xbf16> to vector<256x24xbf16>
    %c1_23 = arith.constant 1 : index
    %c0_24 = arith.constant 0 : index
    %c0_25 = arith.constant 0 : index
    %34 = vector.load %arg3[%c1_23, %c0_24, %c0_25] : memref<3x24x32xbf16, #tpu.memory_space<vmem>>, vector<1x24x32xbf16>
    %35 = vector.shape_cast %34 : vector<1x24x32xbf16> to vector<24x32xbf16>
    %cst_26 = arith.constant dense<0.000000e+00> : vector<256x32xf32>
    %36 = tpu.matmul %33, %35, %cst_26 {dimension_numbers = #tpu.dot_dimension_numbers<[1], [0], [0], [1], [0, 0, 1, 1], [], []>} : vector<256x24xbf16>, vector<24x32xbf16>, vector<256x32xf32> -> vector<256x32xf32>
    %37 = arith.addf %19, %36 : vector<256x32xf32>
    %c0_i32_27 = arith.constant 0 : i32
    %38 = arith.addi %0, %c0_i32_27 : i32
    %c0_28 = arith.constant 0 : index
    %39 = arith.index_cast %38 : i32 to index
    %c2 = arith.constant 2 : index
    %c0_29 = arith.constant 0 : index
    %40 = vector.load %arg2[%c0_28, %39, %c2, %c0_29] : memref<1x18x34x8xbf16, #tpu.memory_space<vmem>>, vector<1x8x32x8xbf16>
    %41 = vector.shape_cast %40 : vector<1x8x32x8xbf16> to vector<8x32x8xbf16>
    %c1_i32_30 = arith.constant 1 : i32
    %42 = arith.addi %0, %c1_i32_30 : i32
    %c0_31 = arith.constant 0 : index
    %43 = arith.index_cast %42 : i32 to index
    %c2_32 = arith.constant 2 : index
    %c0_33 = arith.constant 0 : index
    %44 = vector.load %arg2[%c0_31, %43, %c2_32, %c0_33] : memref<1x18x34x8xbf16, #tpu.memory_space<vmem>>, vector<1x8x32x8xbf16>
    %45 = vector.shape_cast %44 : vector<1x8x32x8xbf16> to vector<8x32x8xbf16>
    %c2_i32_34 = arith.constant 2 : i32
    %46 = arith.addi %0, %c2_i32_34 : i32
    %c0_35 = arith.constant 0 : index
    %47 = arith.index_cast %46 : i32 to index
    %c2_36 = arith.constant 2 : index
    %c0_37 = arith.constant 0 : index
    %48 = vector.load %arg2[%c0_35, %47, %c2_36, %c0_37] : memref<1x18x34x8xbf16, #tpu.memory_space<vmem>>, vector<1x8x32x8xbf16>
    %49 = vector.shape_cast %48 : vector<1x8x32x8xbf16> to vector<8x32x8xbf16>
    %50 = tpu.concatenate %41, %45, %49 in 2 : vector<8x32x8xbf16>, vector<8x32x8xbf16>, vector<8x32x8xbf16> -> vector<8x32x24xbf16>
    %51 = vector.shape_cast %50 : vector<8x32x24xbf16> to vector<256x24xbf16>
    %c2_38 = arith.constant 2 : index
    %c0_39 = arith.constant 0 : index
    %c0_40 = arith.constant 0 : index
    %52 = vector.load %arg3[%c2_38, %c0_39, %c0_40] : memref<3x24x32xbf16, #tpu.memory_space<vmem>>, vector<1x24x32xbf16>
    %53 = vector.shape_cast %52 : vector<1x24x32xbf16> to vector<24x32xbf16>
    %cst_41 = arith.constant dense<0.000000e+00> : vector<256x32xf32>
    %54 = tpu.matmul %51, %53, %cst_41 {dimension_numbers = #tpu.dot_dimension_numbers<[1], [0], [0], [1], [0, 0, 1, 1], [], []>} : vector<256x24xbf16>, vector<24x32xbf16>, vector<256x32xf32> -> vector<256x32xf32>
    %55 = arith.addf %37, %54 : vector<256x32xf32>
    %c0_42 = arith.constant 0 : index
    %c0_43 = arith.constant 0 : index
    %56 = vector.load %arg4[%c0_42, %c0_43] : memref<1x32xf32, #tpu.memory_space<vmem>>, vector<1x32xf32>
    %57 = vector.broadcast %56 : vector<1x32xf32> to vector<256x32xf32>
    %58 = arith.addf %55, %57 : vector<256x32xf32>
    %cst_44 = arith.constant 0.000000e+00 : f32
    %59 = vector.broadcast %cst_44 : f32 to vector<256x32xf32>
    %60 = arith.maximumf %58, %59 : vector<256x32xf32>
    %61 = vector.shape_cast %60 : vector<256x32xf32> to vector<8x32x32xf32>
    %c0_45 = arith.constant 0 : index
    %c0_46 = arith.constant 0 : index
    %c0_47 = arith.constant 0 : index
    %c0_48 = arith.constant 0 : index
    %62 = vector.load %arg5[%c0_45, %c0_46, %c0_47, %c0_48] : memref<1x8x32x32xf32, #tpu.memory_space<vmem>>, vector<1x8x32x32xf32>
    %63 = vector.shape_cast %62 : vector<1x8x32x32xf32> to vector<8x32x32xf32>
    %64 = vector.shape_cast %61 : vector<8x32x32xf32> to vector<1x8x32x32xf32>
    tpu.vector_store %arg5[%c0_45, %c0_46, %c0_47, %c0_48], %64 {strides = array<i32>} : memref<1x8x32x32xf32, #tpu.memory_space<vmem>>, vector<1x8x32x32xf32>,
    return
  }
  func.func @transform_0(%arg0: i32, %arg1: i32) -> (i32, i32, i32, i32) {
    %c0_i32 = arith.constant 0 : i32
    %c0_i32_0 = arith.constant 0 : i32
    %c0_i32_1 = arith.constant 0 : i32
    %c0_i32_2 = arith.constant 0 : i32
    return %arg0, %c0_i32, %c0_i32_0, %c0_i32_1 : i32, i32, i32, i32
  }
  func.func @transform_1(%arg0: i32, %arg1: i32) -> (i32, i32, i32) {
    %c0_i32 = arith.constant 0 : i32
    %c0_i32_0 = arith.constant 0 : i32
    %c0_i32_1 = arith.constant 0 : i32
    %c0_i32_2 = arith.constant 0 : i32
    return %c0_i32, %c0_i32_0, %c0_i32_1 : i32, i32, i32
  }
  func.func @transform_2(%arg0: i32, %arg1: i32) -> (i32, i32) {
    %c0_i32 = arith.constant 0 : i32
    %c0_i32_0 = arith.constant 0 : i32
    %c0_i32_1 = arith.constant 0 : i32
    return %c0_i32, %c0_i32_0 : i32, i32
  }
  func.func @transform_3(%arg0: i32, %arg1: i32) -> (i32, i32, i32, i32) {
    %c0_i32 = arith.constant 0 : i32
    %c0_i32_0 = arith.constant 0 : i32
    %c0_i32_1 = arith.constant 0 : i32
    return %arg0, %arg1, %c0_i32, %c0_i32_0 : i32, i32, i32, i32
  }
}

</mosaic_0001>

<bundles_post_ra>
// kernel: tpu_custom_call.1
= control target key start
LH: loop header
LB: loop body
LE: loop exit
PB: predicated region body
PF: predicated region fallthrough
CT: control target
= control target key end

     0   :  { %8 = vsyncpa [#allocation3], 0  ;;  %s3689_s0 = inlined_call_operand.vmem [shape: bf16[1,18,34,8], index: 0, kind: input, shape index: {}]   ;;  %s3690_s1 = inlined_call_operand.vmem [shape: bf16[3,24,32], index: 1, kind: input, shape index: {}]   ;;  %s3691_s2 = inlined_call_operand.vmem [shape: f32[1,32], index: 2, kind: input, shape index: {}]   ;;  %s3692_s3 = inlined_call_operand.hbm [shape: f32[1,16,32,32], index: 3, kind: output, shape index: {}]  }
   0x1   :  { %10 = vsyncpa [#allocation3 + $0x1], 0  ;;  %s2823_s12 = smov 0   ;;  %s2825_s13 = smov 0  }
   0x2   :  { %s2827_s14 = smov 0   ;;  %s2829_s15 = smov 0  }
   0x3   :  { %s2831_s16 = smov 0   ;;  %s2833_s17 = smov 0  }
   0x4 LB: > { %s2116_s18 = sadd.s32 4294967295, %s2797_s17   ;;  %s2117_s19 = sadd.s32 4294967294, %s2797_s17   ;;  %s2797_s17 = sphi %s2833_s17, %s16_s17   ;;  %s2793_s16 = sphi %s2831_s16, %s3699_s16   ;;  %s2789_s15 = sphi %s2829_s15, %s3698_s15   ;;  %s2785_s14 = sphi %s2827_s14, %s3697_s14   ;;  %s2781_s13 = sphi %s2825_s13, %s3696_s13   ;;  %s2777_s12 = sphi %s2823_s12, %s3695_s12  }
   0x5   : > { %s25_s20 = sadd.s32 1, %s2793_s16  ;;  %s105_s21 = sadd.s32 1, %s2785_s14 }
   0x6   : > { %p26_p0 = scmp.ge.s32.totalorder %s25_s20, 2  ;;  %p115_p1 = scmp.ne.s32.totalorder %s2785_s14, %s2781_s13 }
   0x7   : > { %p116_p2 = scmp.eq.s32.totalorder %s2116_s18, 1  ;;  %p121_p3 = scmp.ne.s32.totalorder %s2781_s13, %s2777_s12 }
   0x8   : > { %s3701_s20 = smov (%p26_p0, %s25_s20), 0  ;;  %p122_p5 = scmp.eq.s32.totalorder %s2117_s19, 1 }
   0x9   : > { %p2863_p4 = por %p116_p2, %p115_p1  ;;  %s101_s23 = ssub.s32 %s2793_s16, %s3701_s20 }
   0xa   : > { %p2120_p6 = scmp.ge.s32.totalorder %s2797_s17, 1  ;;  %p103_p7 = scmp.eq.s32.totalorder %s101_s23, 0 }
   0xb   : > { %p2870_p8 = por %p122_p5, %p121_p3  ;;  %p154_p9 = scmp.lt.s32.totalorder %s2797_s17, 3 }
   0xc   : > { %s2876_s25 = scalar_select %p103_p7, %s2785_s14, %s105_s21  }
   0xd   : > { %p155_p10 = pnand %p2120_p6, %p154_p9 }
   0xe   : > { %s2388_s26 = smul.u32 (!%p155_p10), 160, %s2789_s15  ;;  %s2799_s30 = smov (!%p155_p10), 16  }
   0xf   : > { %158 = sbr.rel (%p155_p10) target bundleno = 521 (0x209), region = 32  ;;  %s2800_s4 = smov (!%p155_p10), 8  }
  0x10   : > { %s2882_s29 = scalar_lea.vmem (!%p155_p10), %s3689_s0, %s2388_s26  ;;  %s175_s27 = sand.u32 (!%p155_p10), 1, %s2781_s13  }
  0x11   : > { %s2390_s6 = sshll.u32 (!%p155_p10), %s2789_s15, 12  ;;  %s3643_s15 = scalar_lea.sflag (!%p155_p10), [#allocation3], %s175_s27 }
  0x12   : > { %s3633_s10 = scalar_lea.hbm (!%p155_p10), %s3692_s3, %s2390_s6  ;;  %s2801_s18 = smov (!%p155_p10), [#allocation2]  }
  0x13   : > { %s2725_s19 = sshll.u32 (!%p155_p10), %s2801_s18, 4  ;;  %s2726_s19 = int_to_ptr.vmem [resolvable:$false] %s2725_s19 }
  0x14   : > { %v2177_v0 = vld [vmem:[%s2882_s29 + $0x78] sm:$0xf]  ;;  %v2886_v1 = vld [vmem:[%s2882_s29 + $0x7c] sm:$0xf]  ;;  %v2143_v3 = vld [vmem:[%s2882_s29 + $0x64] sm:$0xf] }
  0x15   : > { %v2233_v2 = vcombine.low %v2177_v0, %v2886_v1  ;;  %v2891_v4 = vld [vmem:[%s2882_s29 + $0x68] sm:$0xf]  ;;  %v2127_v6 = vld [vmem:[%s2882_s29 + $0x14] sm:$0xf]  ;;  %v2897_v7 = vld [vmem:[%s2882_s29 + $0x18] sm:$0xf] }
  0x16   : > { %v2217_v5 = vcombine.low %v2143_v3, %v2891_v4  ;;  %v2623_v8 = vld [vmem:[%s2882_s29 + $0x6c] sm:$0xff]   ;;  %v2209_v9 = vcombine.low %v2127_v6, %v2897_v7  ;;  %v2626_v10 = vld [vmem:[%s2882_s29 + $0x1c] sm:$0xff]   ;;  %v2161_v12 = vld [vmem:[%s2882_s29 + $0x28] sm:$0xf]  ;;  %vm1049_vm0 = vcmask 1043456   ;;  %vm597_vm1 = vcmask 64512  }
  0x17   : > { %581 = vrot.lane.b32.xlu1 %v2233_v2, %s2799_s30  ;;  %v2625_v11 = vld [vmem:[%s2882_s29 + $0x80] sm:$0xff]   ;;  %v2908_v13 = vld [vmem:[%s2882_s29 + $0x2c] sm:$0xf]  ;;  %v2628_v14 = vld [vmem:[%s2882_s29 + $0x74] ss:$0 sps:$4 sm:$0x11]  }
  0x18   : > { %469 = vrot.lane.b32.xlu0 %v2217_v5, %s2800_s4  ;;  %v2225_v15 = vcombine.low %v2161_v12, %v2908_v13  ;;  %v2630_v16 = vld [vmem:[%s2882_s29 + $0x88] ss:$0 sps:$4 sm:$0x11]   ;;  %v2629_v17 = vld [vmem:[%s2882_s29 + $0x30] sm:$0xff]   ;;  %v2147_v20 = vld [vmem:[%s2882_s29 + $0x78] sm:$0xf] }
  0x19   : > { %v2632_v18 = vld [vmem:[%s2882_s29 + $0x38] ss:$0 sps:$4 sm:$0x11]   ;;  %v2631_v19 = vld [vmem:[%s2882_s29 + $0x24] ss:$0 sps:$4 sm:$0x11]  }
  0x1a   : > { %v2924_v21 = vld [vmem:[%s2882_s29 + $0x7c] sm:$0xf]  ;;  %v2634_v22 = vld [vmem:[%s2882_s29 + $0x80] sm:$0xff]   ;;  %v2181_v23 = vld [vmem:[%s2882_s29 + $0x8c] sm:$0xf]  ;;  %vm646_vm2 = vcmask 130048  }
  0x1b   : > { %453 = vrot.lane.b32.xlu1 %v2209_v9, %s2800_s4  ;;  %v2219_v24 = vcombine.low %v2147_v20, %v2924_v21  ;;  %v2131_v25 = vld [vmem:[%s2882_s29 + $0x28] sm:$0xf]  ;;  %v2933_v26 = vld [vmem:[%s2882_s29 + $0x2c] sm:$0xf]  ;;  %v2936_v27 = vld [vmem:[%s2882_s29 + $0x90] sm:$0xf] }
  0x1c   : > { %471 = vrot.lane.b32.xlu0 %v2623_v8, %s2800_s4  ;;  %v2211_v28 = vcombine.low %v2131_v25, %v2933_v26  ;;  %v2235_v29 = vcombine.low %v2181_v23, %v2936_v27  ;;  %v2637_v30 = vld [vmem:[%s2882_s29 + $0x94] sm:$0xff]   ;;  %v2165_v32 = vld [vmem:[%s2882_s29 + $0x3c] sm:$0xf]  ;;  %v2948_v33 = vld [vmem:[%s2882_s29 + $0x40] sm:$0xf]  ;;  %vm1000_vm4 = vcmask 195584  }
  0x1d   : > { %v2638_v31 = vld [vmem:[%s2882_s29 + $0x30] sm:$0xff]   ;;  %v2640_v34 = vld [vmem:[%s2882_s29 + $0x88] ss:$0 sps:$4 sm:$0x11]   ;;  %v2227_v35 = vcombine.low %v2165_v32, %v2948_v33  ;;  %v2151_v40 = vld [vmem:[%s2882_s29 + $0x8c] sm:$0xf] }
  0x1e   : > { %v2642_v36 = vld [vmem:[%s2882_s29 + $0x9c] ss:$0 sps:$4 sm:$0x11]   ;;  %v2641_v37 = vld [vmem:[%s2882_s29 + $0x44] sm:$0xff]   ;;  %v2964_v41 = vld [vmem:[%s2882_s29 + $0x90] sm:$0xf] }
  0x1f   : > { %455 = vrot.lane.b32.xlu1 %v2626_v10, %s2800_s4  ;;  %v2644_v38 = vld [vmem:[%s2882_s29 + $0x4c] ss:$0 sps:$4 sm:$0x11]   ;;  %v2643_v39 = vld [vmem:[%s2882_s29 + $0x38] ss:$0 sps:$4 sm:$0x11]   ;;  %v2221_v45 = vcombine.low %v2151_v40, %v2964_v41 }
  0x20   : > { %583 = vrot.lane.b32.xlu0 %v2625_v11, %s2799_s30  ;;  %v2646_v42 = vld [vmem:[%s2882_s29 + $0x94] sm:$0xff]   ;;  %v2689_v44 = vld [vmem:[%s3690_s1 + $0xc] sm:$0xff]   ;;  %v2135_v46 = vld [vmem:[%s2882_s29 + $0x3c] sm:$0xf]  ;;  %vm850_vm3 = vsmask.f32 7424 }
  0x21   : > { %v2688_v43 = vld [vmem:[%s3690_s1 + $0x14] ss:$0 sps:$4 sm:$0xff]   ;;  %v2978_v47 = vld [vmem:[%s2882_s29 + $0x40] sm:$0xf]  ;;  %v2982_v49 = vld [vmem:[%s2882_s29 + $0xa4] sm:$0xf] }
  0x22   : > { %v2185_v48 = vld [vmem:[%s2882_s29 + $0xa0] sm:$0xf]  ;;  %2558 = vmatprep.subr.msk.bf16.mxu1 %vm1049_vm0, %v2688_v43  ;;  %v1051_v50 = vsel %vm1049_vm0, %v2688_v43, 0  ;;  %2557 = vmatprep.subr.msk.bf16.mxu0 %vm1049_vm0, %v2688_v43  ;;  %v2213_v51 = vcombine.low %v2135_v46, %v2978_v47  ;;  %v2649_v53 = vld [vmem:[%s2882_s29 + $0xa8] sm:$0xff]   ;;  %v2169_v55 = vld [vmem:[%s2882_s29 + $0x50] sm:$0xf] }
  0x23   : > { %762 = vrot.lane.b32.xlu1 %v2628_v14, %s2800_s4  ;;  %2555 = vmatpush3.bf16.msra.mxu1 %v1051_v50  ;;  %v2237_v52 = vcombine.low %v2185_v48, %v2982_v49  ;;  %v2650_v54 = vld [vmem:[%s2882_s29 + $0x44] sm:$0xff]   ;;  %v2997_v56 = vld [vmem:[%s2882_s29 + $0x54] sm:$0xf]  ;;  %v2652_v57 = vld [vmem:[%s2882_s29 + $0x9c] ss:$0 sps:$4 sm:$0x11]  }
  0x24   : > { %565 = vrot.lane.b32.xlu0 %v2225_v15, %s2799_s30  ;;  %2446 = vmatpush3.bf16.msra.mxu0 %v1051_v50  ;;  %v2229_v58 = vcombine.low %v2169_v55, %v2997_v56  ;;  %v2654_v59 = vld [vmem:[%s2882_s29 + $0xb0] ss:$0 sps:$4 sm:$0x11]   ;;  %v2705_v60 = vld [vmem:[%s3690_s1 + $0x8] ss:$0 sps:$4 sm:$0xff]   ;;  %v2653_v62 = vld [vmem:[%s2882_s29 + $0x58] sm:$0xff]  }
  0x25   : > { %2554 = vmatprep.subr.bf16.mxu1 %v2689_v44  ;;  %2447 = vmatprep.subr.bf16.mxu0 %v2689_v44  ;;  %v2706_v61 = vld [vmem:[%s3690_s1 + $0x20] ss:$0 sps:$4 sm:$0xff]   ;;  %v3015_v63 = vsel %vm1049_vm0, %v2705_v60, 0  ;;  %v2655_v2 = vld [vmem:[%s2882_s29 + $0x4c] ss:$0 sps:$4 sm:$0x11]  }
  0x26   : > { %v2656_v0 = vld [vmem:[%s2882_s29 + $0x60] ss:$0 sps:$4 sm:$0x11]   ;;  %v3024_v5 = vld [vmem:[%s2882_s29 + $0xa4] sm:$0xf]  ;;  %v2658_v6 = vld [vmem:[%s2882_s29 + $0xa8] sm:$0xff]  }
  0x27   : > { %802 = vrot.lane.b32.xlu1 %v2630_v16, %s2799_s30  ;;  %2556 = vmatpush3.bf16.msra.mxu1 %v2689_v44  ;;  %v2155_v3 = vld [vmem:[%s2882_s29 + $0xa0] sm:$0xf]  ;;  %v2139_v9 = vld [vmem:[%s2882_s29 + $0x50] sm:$0xf]  ;;  %v2140_v10 = vld [vmem:[%s2882_s29 + $0x54] sm:$0xf] }
  0x28   : > { %567 = vrot.lane.b32.xlu0 %v2629_v17, %s2799_s30  ;;  %2448 = vmatpush3.bf16.msra.mxu0 %v2689_v44  ;;  %v2223_v8 = vcombine.low %v2155_v3, %v3024_v5  ;;  %v3033_v11 = vsel %vm1049_vm0, %v2706_v61, 0  ;;  %v2189_v12 = vld [vmem:[%s2882_s29 + $0xb4] sm:$0xf]  ;;  %v3037_v14 = vld [vmem:[%s2882_s29 + $0xb8] sm:$0xf]  ;;  %v2215_v15 = vcombine.low %v2139_v9, %v2140_v10  ;;  %v2665_v25 = vld [vmem:[%s2882_s29 + $0x6c] sm:$0xff]  }
  0x29   : > { %2559 = vmatprep.subr.msk.bf16.mxu1 %vm1049_vm0, %v2705_v60  ;;  %2560 = vmatprep.subr.msk.bf16.mxu0 %vm1049_vm0, %v2706_v61  ;;  %v2239_v16 = vcombine.low %v2189_v12, %v3037_v14  ;;  %v2662_v17 = vld [vmem:[%s2882_s29 + $0x58] sm:$0xff]   ;;  %v2174_v20 = vld [vmem:[%s2882_s29 + $0x68] sm:$0xf]  ;;  %v3089_v50 = vld [vmem:[%s2882_s29 + $0x54] sm:$0xf]  ;;  %vm1611_vm5 = vcmask 1046528  }
  0x2a   : > { %v2322_v40 = vld [vmem:[%s2882_s29 + $0x3c] sm:$0xe]  ;;  %v2335_v60 = vld [vmem:[%s2882_s29 + $0xb4] sm:$0xe]  ;;  %vm1980_vm6 = vcmask 261120   ;;  %s2727_s21 = scalar_lea.vmem %s2726_s19, 8192 }
  0x2b   : > { %794 = vrot.lane.b32.xlu1 %v2632_v18, %s2799_s30  ;;  %v2661_v18 = vld [vmem:[%s2882_s29 + $0xbc] sm:$0xff]  }
  0x2c   : > { %754 = vrot.lane.b32.xlu0 %v2631_v19, %s2800_s4  ;;  %v2173_v19 = vld [vmem:[%s2882_s29 + $0x64] sm:$0xf]  ;;  %v2680_v3 = vld [vmem:[%s2882_s29 + $0x58] sm:$0xff]  }
  0x2d   : > { %v2231_v23 = vcombine.low %v2173_v19, %v2174_v20  ;;  %v2687_v19 = vld [vmem:[%s2882_s29 + $0x60] ss:$0 sps:$4 sm:$0x11]  }
  0x2f   : > { %475 = vrot.lane.b32.xlu1 %v2634_v22, %s2800_s4  ;;  %v2664_v22 = vld [vmem:[%s2882_s29 + $0xb0] ss:$0 sps:$4 sm:$0x11]  }
  0x30   : > { %473 = vrot.lane.b32.xlu0 %v2219_v24, %s2800_s4  ;;  %v2666_v24 = vld [vmem:[%s2882_s29 + $0xc4] ss:$0 sps:$4 sm:$0x11]  }
  0x33   : > { %457 = vrot.lane.b32.xlu1 %v2211_v28, %s2800_s4  ;;  %v2668_v28 = vld [vmem:[%s2882_s29 + $0x74] ss:$0 sps:$4 sm:$0x11]  }
  0x34   : > { %585 = vrot.lane.b32.xlu0 %v2235_v29, %s2799_s30  ;;  %v2667_v29 = vld [vmem:[%s2882_s29 + $0x60] ss:$0 sps:$4 sm:$0x11]  }
  0x37   : > { %459 = vrot.lane.b32.xlu1 %v2638_v31, %s2800_s4  ;;  %v2320_v31 = vld [vmem:[%s2882_s29 + $0x14] sm:$0xe] }
  0x38   : > { %587 = vrot.lane.b32.xlu0 %v2637_v30, %s2799_s30  ;;  %v2328_v30 = vld [vmem:[%s2882_s29 + $0x28] sm:$0xe] }
  0x39   : > { %v2352_v32 = vcombine.low %v2328_v30, %v2908_v13 }
  0x3b   : > { %764 = vrot.lane.b32.xlu1 %v2640_v34, %s2800_s4  ;;  %v2344_v34 = vcombine.low %v2320_v31, %v2897_v7  ;;  %v2346_v7 = vcombine.low %v2322_v40, %v2978_v47  ;;  %v205_v47 = vld [vmem:[%s2882_s29 + $0x50] sm:$0xf] }
  0x3c   : > { %569 = vrot.lane.b32.xlu0 %v2227_v35, %s2799_s30  ;;  %v2329_v35 = vld [vmem:[%s2882_s29 + $0x3c] sm:$0xe] }
  0x3f   : > { %804 = vrot.lane.b32.xlu1 %v2642_v36, %s2799_s30  ;;  %v2321_v36 = vld [vmem:[%s2882_s29 + $0x28] sm:$0xe] }
  0x40   : > { %571 = vrot.lane.b32.xlu0 %v2641_v37, %s2799_s30  ;;  %v2353_v37 = vcombine.low %v2329_v35, %v2948_v33  ;;  %v2331_v33 = vld [vmem:[%s2882_s29 + $0x64] sm:$0xe] }
  0x41   : > { %v2355_v43 = vcombine.low %v2331_v33, %v2174_v20 }
  0x43   : > { %796 = vrot.lane.b32.xlu1 %v2644_v38, %s2799_s30  ;;  %v2345_v38 = vcombine.low %v2321_v36, %v2933_v26  ;;  %v2332_v26 = vld [vmem:[%s2882_s29 + $0x78] sm:$0xe] }
  0x44   : > { %756 = vrot.lane.b32.xlu0 %v2643_v39, %s2800_s4  ;;  %v2330_v39 = vld [vmem:[%s2882_s29 + $0x50] sm:$0xe]  ;;  %v2356_v46 = vcombine.low %v2332_v26, %v2886_v1 }
  0x45   : > { %v2354_v13 = vcombine.low %v2330_v39, %v2997_v56  ;;  %v2326_v56 = vld [vmem:[%s2882_s29 + $0x8c] sm:$0xe] }
  0x47   : > { %479 = vrot.lane.b32.xlu1 %v2646_v42, %s2800_s4  ;;  %v2323_v42 = vld [vmem:[%s2882_s29 + $0x50] sm:$0xe] }
  0x48   : > { %477 = vrot.lane.b32.xlu0 %v2221_v45, %s2800_s4  ;;  %v2347_v44 = vcombine.low %v2323_v42, %v2140_v10  ;;  %v2324_v45 = vld [vmem:[%s2882_s29 + $0x64] sm:$0xe] }
  0x49   : > { %v2348_v48 = vcombine.low %v2324_v45, %v2891_v4  ;;  %v2334_v4 = vld [vmem:[%s2882_s29 + $0xa0] sm:$0xe] }
  0x4b   : > { %461 = vrot.lane.b32.xlu1 %v2213_v51, %s2800_s4  ;;  %v2333_v51 = vld [vmem:[%s2882_s29 + $0x8c] sm:$0xe] }
  0x4c   : > { %589 = vrot.lane.b32.xlu0 %v2237_v52, %s2799_s30  ;;  %v2325_v52 = vld [vmem:[%s2882_s29 + $0x78] sm:$0xe] }
  0x4d   : > { %v2349_v1 = vcombine.low %v2325_v52, %v2924_v21  ;;  %v2350_v21 = vcombine.low %v2326_v56, %v2964_v41  ;;  %v209_v52 = vld [vmem:[%s2882_s29 + $0x64] sm:$0xf] }
  0x4f   : > { %463 = vrot.lane.b32.xlu1 %v2650_v54, %s2800_s4  ;;  %v2357_v54 = vcombine.low %v2333_v51, %v2936_v27  ;;  %v2358_v27 = vcombine.low %v2334_v4, %v2982_v49  ;;  %v2359_v49 = vcombine.low %v2335_v60, %v3037_v14  ;;  %v2711_v60 = vld [vmem:[%s3690_s1 + $0x18] sm:$0xff]  }
  0x50   : > { %591 = vrot.lane.b32.xlu0 %v2649_v53, %s2799_s30  ;;  %v2201_v53 = vcombine.low %v205_v47, %v3089_v50 }
  0x53   : > { %766 = vrot.lane.b32.xlu1 %v2652_v57, %s2800_s4 }
  0x54   : > { %573 = vrot.lane.b32.xlu0 %v2229_v58, %s2799_s30 }
  0x57   : > { %806 = vrot.lane.b32.xlu1 %v2654_v59, %s2799_s30 }
  0x58   : > { %575 = vrot.lane.b32.xlu0 %v2653_v62, %s2799_s30  ;;  %v2327_v62 = vld [vmem:[%s2882_s29 + $0xa0] sm:$0xe] }
  0x59   : > { %v2351_v41 = vcombine.low %v2327_v62, %v3024_v5 }
  0x5b   : > { %798 = vrot.lane.b32.xlu1 %v2656_v0, %s2799_s30 }
  0x5c   : > { %758 = vrot.lane.b32.xlu0 %v2655_v2, %s2800_s4 }
  0x5f   : > { %483 = vrot.lane.b32.xlu1 %v2658_v6, %s2800_s4  ;;  %v189_v6 = vld [vmem:[%s2882_s29] sm:$0xf] }
  0x60   : > { %481 = vrot.lane.b32.xlu0 %v2223_v8, %s2800_s4  ;;  %v3114_v8 = vld [vmem:[%s2882_s29 + $0x4] sm:$0xf] }
  0x63   : > { %465 = vrot.lane.b32.xlu1 %v2215_v15, %s2800_s4  ;;  %v2193_v15 = vcombine.low %v189_v6, %v3114_v8  ;;  %v193_v6 = vld [vmem:[%s2882_s29 + $0x14] sm:$0xf] }
  0x64   : > { %593 = vrot.lane.b32.xlu0 %v2239_v16, %s2799_s30 }
  0x67   : > { %467 = vrot.lane.b32.xlu1 %v2662_v17, %s2800_s4 }
  0x68   : > { %595 = vrot.lane.b32.xlu0 %v2661_v18, %s2799_s30 }
  0x6b   : > { %768 = vrot.lane.b32.xlu1 %v2664_v22, %s2800_s4  ;;  %v2684_v22 = vld [vmem:[%s2882_s29 + $0x8] sm:$0xff]  }
  0x6c   : > { %577 = vrot.lane.b32.xlu0 %v2231_v23, %s2799_s30 }
  0x6f   : > { %808 = vrot.lane.b32.xlu1 %v2666_v24, %s2799_s30 }
  0x70   : > { %579 = vrot.lane.b32.xlu0 %v2665_v25, %s2799_s30 }
  0x73   : > { %800 = vrot.lane.b32.xlu1 %v2668_v28, %s2799_s30 }
  0x74   : > { %760 = vrot.lane.b32.xlu0 %v2667_v29, %s2800_s4 }
  0x77   : > { %1531 = vrot.lane.b32.xlu1 %v2352_v32, %s2799_s30 }
  0x78   : > { %1491 = vrot.lane.b32.xlu0 %v2344_v34, %s2800_s4 }
  0x7b   : > { %1533 = vrot.lane.b32.xlu1 %v2353_v37, %s2799_s30 }
  0x7c   : > { %1493 = vrot.lane.b32.xlu0 %v2345_v38, %s2800_s4 }
  0x7f   : > { %1535 = vrot.lane.b32.xlu1 %v2354_v13, %s2799_s30  ;;  %v2690_v13 = vld [vmem:[%s2882_s29 + $0x10] ss:$0 sps:$4 sm:$0x11]  }
  0x80   : > { %1495 = vrot.lane.b32.xlu0 %v2346_v7, %s2800_s4 }
  0x83   : > { %1537 = vrot.lane.b32.xlu1 %v2355_v43, %s2799_s30 }
  0x84   : > { %1497 = vrot.lane.b32.xlu0 %v2347_v44, %s2800_s4 }
  0x87   : > { %1539 = vrot.lane.b32.xlu1 %v2356_v46, %s2799_s30 }
  0x88   : > { %1499 = vrot.lane.b32.xlu0 %v2348_v48, %s2800_s4  ;;  %v2710_v48 = vld [vmem:[%s3690_s1] sm:$0xff]  }
  0x89   : > { %v582_v55 = vpop.permute.xlu1 %581 }
  0x8a   : > { %v470_v57 = vpop.permute.xlu0 %469 }
  0x8b   : > { %v624_v58 = vsel %vm597_vm1, %v2201_v53, %v470_v57  ;;  %1541 = vrot.lane.b32.xlu1 %v2357_v54, %s2799_s30  ;;  %v3158_v53 = vld [vmem:[%s2882_s29 + $0x68] sm:$0xf] }
  0x8c   : > { %v3104_v59 = vsel %vm646_vm2, %v624_v58, %v582_v55  ;;  %1501 = vrot.lane.b32.xlu0 %v2349_v1, %s2800_s4  ;;  %v2203_v58 = vcombine.low %v209_v52, %v3158_v53 }
  0x8d   : > { %v454_v61 = vpop.permute.xlu1 %453  ;;  %v921_v0 = vshll.u32 %v3104_v59, 16  ;;  %v919_v18 = vshrl.u32 %v3104_v59, 16 }
  0x8e   : > { %v472_v2 = vpop.permute.xlu0 %471  ;;  %v600_v20 = vsel %vm597_vm1, %v2193_v15, %v454_v61 }
  0x8f   : > { %1543 = vrot.lane.b32.xlu1 %v2358_v27, %s2799_s30  ;;  %v923_v10 = vrot.slane %v921_v0, 1  ;;  %v627_v12 = vsel %vm597_vm1, %v2680_v3, %v472_v2  ;;  %v2692_v2 = vld [vmem:[%s2882_s29 + $0x6c] sm:$0xff]  }
  0x90   : > { %1503 = vrot.lane.b32.xlu0 %v2350_v21, %s2800_s4 }
  0x91   : > { %v456_v9 = vpop.permute.xlu1 %455  ;;  %v924_v24 = vor.u32 %v923_v10, %v919_v18 }
  0x92   : > { %v584_v16 = vpop.permute.xlu0 %583  ;;  %v603_v34 = vsel %vm597_vm1, %v2684_v22, %v456_v9 }
  0x93   : > { %v3123_v17 = vsel %vm646_vm2, %v627_v12, %v584_v16  ;;  %1545 = vrot.lane.b32.xlu1 %v2359_v49, %s2799_s30  ;;  %v3182_v49 = vld [vmem:[%s2882_s29 + $0x18] sm:$0xf]  ;;  %s2121_s30 = sshll.u32 %s175_s27, 8 }
  0x94   : > { %1505 = vrot.lane.b32.xlu0 %v2351_v41, %s2800_s4  ;;  %v925_v14 = vshll.u32 %v3123_v17, 16  ;;  %v929_v38 = vshrl.u32 %v3123_v17, 16  ;;  %v2195_v15 = vcombine.low %v193_v6, %v3182_v49  ;;  %s3511_s5 = scalar_lea.vmem [#allocation2], %s2121_s30 }
  0x95   : > { %v763_v5 = vpop.permute.xlu1 %762  ;;  %s2030_s7 = sshll.u32 %s3511_s5, 4  ;;  %s3637_s7 = int_to_ptr.vmem [resolvable:$true] %s2030_s7 }
  0x96   : > { %v566_v23 = vpop.permute.xlu0 %565  ;;  %v927_v25 = vrot.slane %v925_v14, 1  ;;  %v824_v31 = vsel %vm597_vm1, %v2687_v19, %v763_v5  ;;  %s2721_s11 = scalar_lea.vmem %s3637_s7, 4096  ;;  %p2728_p0 = scmp.lt.s32.totalorder %s3637_s7, %s2726_s19 }
  0x97   : > { %v3133_v28 = vsel %vm646_vm2, %v600_v20, %v566_v23  ;;  %p2722_p11 = scmp.ne.s32.totalorder %s3637_s7, %s2721_s11  ;;  %p2729_p1 = scmp.lt.s32.totalorder %s2727_s21, %s2721_s11 }
  0x98   : > { %v853_v29 = vshll.u32 %v3133_v28, 16  ;;  %v928_v30 = vsel %vm850_vm3, %v924_v24, %v927_v25  ;;  %v851_v7 = vshrl.u32 %v3133_v28, 16  ;;  %v931_v42 = vor.u32 %v929_v38, %v927_v25  ;;  %v2694_v24 = vld [vmem:[%s2882_s29 + $0x1c] sm:$0xff]  }
  0x99   : > { %2465 = vmatprep.mubr.msk.bf16.mxu1 %vm1000_vm4, %v928_v30  ;;  %v803_v32 = vpop.permute.xlu1 %802  ;;  %p2723_p12 = pnand %p2722_p11, %p2863_p4  ;;  %p2730_p2 = por %p2729_p1, %p2728_p0 }
  0x9a   : > { %v855_v35 = vrot.slane %v853_v29, 1  ;;  %v568_v36 = vpop.permute.xlu0 %567  ;;  %v3141_v37 = vsel %vm646_vm2, %v824_v31, %v803_v32 }
  0x9b   : > { %v3145_v39 = vsel %vm646_vm2, %v603_v34, %v568_v36  ;;  %v932_v40 = vshll.u32 %v3141_v37, 16  ;;  %p2724_p13 = pneg %p2723_p12 }
  0x9c   : > { %v857_v33 = vshll.u32 %v3145_v39, 16  ;;  %v856_v45 = vor.u32 %v855_v35, %v851_v7  ;;  %v861_v4 = vshrl.u32 %v3145_v39, 16 }
  0x9d   : > { %v934_v43 = vrot.slane %v932_v40, 1  ;;  %v795_v26 = vpop.permute.xlu1 %794  ;;  %p2731_p3 = pnand %p2730_p2, %p2724_p13 }
  0x9e   : > { %v755_v44 = vpop.permute.xlu0 %754  ;;  %v859_v46 = vrot.slane %v857_v33, 1 }
  0x9f   : > { %v812_v47 = vsel %vm597_vm1, %v2690_v13, %v755_v44  ;;  %v935_v51 = vsel %vm850_vm3, %v931_v42, %v934_v43  ;;  %v2696_v42 = vld [vmem:[%s2882_s29 + $0x24] ss:$0 sps:$4 sm:$0x11]  }
  0xa0   : > { %v3161_v54 = vsel %vm646_vm2, %v812_v47, %v795_v26  ;;  %v860_v1 = vsel %vm850_vm3, %v856_v45, %v859_v46  ;;  %2466 = vmatmul.mubr.msk.bf16.vlgmr.msra.gmra.mxu1 %vm1000_vm4, %v935_v51  ;;  %v863_v21 = vor.u32 %v861_v4, %v859_v46  ;;  %v213_v4 = vld [vmem:[%s2882_s29 + $0x78] sm:$0xf] }
  0xa1   : > { %v864_v55 = vshll.u32 %v3161_v54, 16  ;;  %2449 = vmatprep.mubr.msk.bf16.mxu0 %vm1000_vm4, %v860_v1  ;;  %v476_v56 = vpop.permute.xlu1 %475  ;;  %2482 = vmatpush3.bf16.msra.mxu1 %v3015_v63 }
  0xa2   : > { %v474_v57 = vpop.permute.xlu0 %473  ;;  %2483 = vmatprep.subr.bf16.mxu1 %v2710_v48  ;;  %v633_v10 = vsel %vm597_vm1, %v2692_v2, %v476_v56 }
  0xa3   : > { %v866_v27 = vrot.slane %v864_v55, 1  ;;  %v630_v0 = vsel %vm597_vm1, %v2203_v58, %v474_v57  ;;  %v3219_v55 = vld [vmem:[%s2882_s29 + $0x7c] sm:$0xf] }
  0xa5   : > { %v458_v61 = vpop.permute.xlu1 %457  ;;  %v867_v62 = vsel %vm850_vm3, %v863_v21, %v866_v27  ;;  %2484 = vmatpush3.bf16.msra.mxu1 %v2710_v48 }
  0xa6   : > { %v586_v3 = vpop.permute.xlu0 %585  ;;  %2450 = vmatmul.mubr.msk.bf16.vlgmr.msra.gmra.mxu0 %vm1000_vm4, %v867_v62  ;;  %v606_v22 = vsel %vm597_vm1, %v2195_v15, %v458_v61  ;;  %v2205_v61 = vcombine.low %v213_v4, %v3219_v55  ;;  %v3239_v15 = vld [vmem:[%s2882_s29 + $0x2c] sm:$0xf] }
  0xa7   : > { %v3178_v63 = vsel %vm646_vm2, %v630_v0, %v586_v3  ;;  %2518 = vmatpush3.bf16.msra.mxu0 %v3033_v11  ;;  %v2695_v11 = vld [vmem:[%s2882_s29 + $0x74] ss:$0 sps:$4 sm:$0x11]  }
  0xa8   : > { %v938_v41 = vshll.u32 %v3178_v63, 16  ;;  %2519 = vmatprep.subr.bf16.mxu0 %v2711_v60  ;;  %v936_v14 = vshrl.u32 %v3178_v63, 16 }
  0xa9   : > { %v460_v9 = vpop.permute.xlu1 %459 }
  0xaa   : > { %v940_v12 = vrot.slane %v938_v41, 1  ;;  %v588_v16 = vpop.permute.xlu0 %587  ;;  %v609_v35 = vsel %vm597_vm1, %v2694_v24, %v460_v9  ;;  %v2698_v41 = vld [vmem:[%s2882_s29 + $0x80] sm:$0xff]  }
  0xab   : > { %v3189_v18 = vsel %vm646_vm2, %v633_v10, %v588_v16  ;;  %2520 = vmatpush3.bf16.msra.mxu0 %v2711_v60 }
  0xac   : > { %v942_v19 = vshll.u32 %v3189_v18, 16  ;;  %v941_v20 = vor.u32 %v940_v12, %v936_v14  ;;  %v946_v13 = vshrl.u32 %v3189_v18, 16  ;;  %v197_v12 = vld [vmem:[%s2882_s29 + $0x28] sm:$0xf] }
  0xad   : > { %v765_v5 = vpop.permute.xlu1 %764 }
  0xae   : > { %v944_v23 = vrot.slane %v942_v19, 1  ;;  %v570_v25 = vpop.permute.xlu0 %569  ;;  %v827_v32 = vsel %vm597_vm1, %v2695_v11, %v765_v5  ;;  %v2197_v5 = vcombine.low %v197_v12, %v3239_v15 }
  0xaf   : > { %v3197_v29 = vsel %vm646_vm2, %v606_v22, %v570_v25  ;;  %v2701_v25 = vld [vmem:[%s2882_s29 + $0x88] ss:$0 sps:$4 sm:$0x11]  }
  0xb0   : > { %v870_v30 = vshll.u32 %v3197_v29, 16  ;;  %v945_v31 = vsel %vm850_vm3, %v941_v20, %v944_v23  ;;  %v868_v43 = vshrl.u32 %v3197_v29, 16  ;;  %v948_v44 = vor.u32 %v946_v13, %v944_v23 }
  0xb1   : > { %2469 = vmatprep.mubr.msk.bf16.mxu1 %vm1000_vm4, %v945_v31  ;;  %v805_v34 = vpop.permute.xlu1 %804 }
  0xb2   : > { %v872_v36 = vrot.slane %v870_v30, 1  ;;  %v572_v38 = vpop.permute.xlu0 %571  ;;  %v3205_v40 = vsel %vm646_vm2, %v827_v32, %v805_v34 }
  0xb3   : > { %v3209_v7 = vsel %vm646_vm2, %v609_v35, %v572_v38  ;;  %v949_v33 = vshll.u32 %v3205_v40, 16  ;;  %v2700_v35 = vld [vmem:[%s2882_s29 + $0x30] sm:$0xff]  }
  0xb4   : > { %v874_v26 = vshll.u32 %v3209_v7, 16  ;;  %v873_v48 = vor.u32 %v872_v36, %v868_v43  ;;  %v878_v58 = vshrl.u32 %v3209_v7, 16 }
  0xb5   : > { %v951_v45 = vrot.slane %v949_v33, 1  ;;  %v797_v46 = vpop.permute.xlu1 %796 }
  0xb6   : > { %v876_v47 = vrot.slane %v874_v26, 1  ;;  %v757_v51 = vpop.permute.xlu0 %756 }
  0xb7   : > { %v815_v52 = vsel %vm597_vm1, %v2696_v42, %v757_v51  ;;  %v952_v1 = vsel %vm850_vm3, %v948_v44, %v951_v45 }
  0xb8   : > { %v3222_v56 = vsel %vm646_vm2, %v815_v52, %v797_v46  ;;  %v877_v57 = vsel %vm850_vm3, %v873_v48, %v876_v47  ;;  %2470 = vmatmul.mubr.msk.bf16.gmra.mxu1 %vm1000_vm4, %v952_v1  ;;  %v880_v62 = vor.u32 %v878_v58, %v876_v47  ;;  %v2702_v52 = vld [vmem:[%s2882_s29 + $0x38] ss:$0 sps:$4 sm:$0x11]  }
  0xb9   : > { %v881_v27 = vshll.u32 %v3222_v56, 16  ;;  %2453 = vmatprep.mubr.msk.bf16.mxu0 %vm1000_vm4, %v877_v57  ;;  %v480_v21 = vpop.permute.xlu1 %479 }
  0xba   : > { %v478_v60 = vpop.permute.xlu0 %477  ;;  %v639_v19 = vsel %vm597_vm1, %v2698_v41, %v480_v21 }
  0xbb   : > { %v883_v0 = vrot.slane %v881_v27, 1  ;;  %v636_v6 = vsel %vm597_vm1, %v2205_v61, %v478_v60 }
  0xbd   : > { %v462_v2 = vpop.permute.xlu1 %461  ;;  %v884_v3 = vsel %vm850_vm3, %v880_v62, %v883_v0 }
  0xbe   : > { %v590_v9 = vpop.permute.xlu0 %589  ;;  %2454 = vmatmul.mubr.msk.bf16.gmra.mxu0 %vm1000_vm4, %v884_v3  ;;  %v612_v32 = vsel %vm597_vm1, %v2197_v5, %v462_v2  ;;  %v217_v2 = vld [vmem:[%s2882_s29 + $0x8c] sm:$0xf]  ;;  %v3275_v3 = vld [vmem:[%s2882_s29 + $0x90] sm:$0xf] }
  0xbf   : > { %v3235_v10 = vsel %vm646_vm2, %v636_v6, %v590_v9 }
  0xc0   : > { %v955_v16 = vshll.u32 %v3235_v10, 16  ;;  %v953_v23 = vshrl.u32 %v3235_v10, 16 }
  0xc1   : > { %v464_v14 = vpop.permute.xlu1 %463 }
  0xc2   : > { %v957_v11 = vrot.slane %v955_v16, 1  ;;  %v592_v20 = vpop.permute.xlu0 %591  ;;  %v615_v26 = vsel %vm597_vm1, %v2700_v35, %v464_v14 }
  0xc3   : > { %v3245_v22 = vsel %vm646_vm2, %v639_v19, %v592_v20  ;;  %v2207_v19 = vcombine.low %v217_v2, %v3275_v3 }
  0xc4   : > { %v959_v24 = vshll.u32 %v3245_v22, 16  ;;  %v958_v31 = vor.u32 %v957_v11, %v953_v23  ;;  %v963_v48 = vshrl.u32 %v3245_v22, 16 }
  0xc5   : > { %v767_v30 = vpop.permute.xlu1 %766 }
  0xc6   : > { %v961_v34 = vrot.slane %v959_v24, 1  ;;  %v574_v36 = vpop.permute.xlu0 %573  ;;  %v830_v42 = vsel %vm597_vm1, %v2701_v25, %v767_v30  ;;  %v2704_v25 = vld [vmem:[%s2882_s29 + $0x94] sm:$0xff]  }
  0xc7   : > { %v3253_v38 = vsel %vm646_vm2, %v612_v32, %v574_v36  ;;  %v201_v32 = vld [vmem:[%s2882_s29 + $0x3c] sm:$0xf] }
  0xc8   : > { %v887_v13 = vshll.u32 %v3253_v38, 16  ;;  %v962_v33 = vsel %vm850_vm3, %v958_v31, %v961_v34  ;;  %v885_v1 = vshrl.u32 %v3253_v38, 16  ;;  %v965_v57 = vor.u32 %v963_v48, %v961_v34  ;;  %v3295_v34 = vld [vmem:[%s2882_s29 + $0x40] sm:$0xf] }
  0xc9   : > { %2473 = vmatprep.mubr.msk.bf16.mxu1 %vm1000_vm4, %v962_v33  ;;  %v807_v43 = vpop.permute.xlu1 %806  ;;  %v2709_v48 = vld [vmem:[%s2882_s29 + $0x9c] ss:$0 sps:$4 sm:$0x11]  }
  0xca   : > { %v889_v44 = vrot.slane %v887_v13, 1  ;;  %v576_v45 = vpop.permute.xlu0 %575  ;;  %v3261_v46 = vsel %vm646_vm2, %v830_v42, %v807_v43  ;;  %v2199_v42 = vcombine.low %v201_v32, %v3295_v34 }
  0xcb   : > { %v3265_v47 = vsel %vm646_vm2, %v615_v26, %v576_v45  ;;  %v966_v51 = vshll.u32 %v3261_v46, 16 }
  0xcc   : > { %v891_v4 = vshll.u32 %v3265_v47, 16  ;;  %v890_v21 = vor.u32 %v889_v44, %v885_v1  ;;  %v895_v9 = vshrl.u32 %v3265_v47, 16 }
  0xcd   : > { %v968_v58 = vrot.slane %v966_v51, 1  ;;  %v799_v27 = vpop.permute.xlu1 %798 }
  0xce   : > { %v893_v60 = vrot.slane %v891_v4, 1  ;;  %v759_v61 = vpop.permute.xlu0 %758 }
  0xcf   : > { %v818_v62 = vsel %vm597_vm1, %v2702_v52, %v759_v61  ;;  %v969_v0 = vsel %vm850_vm3, %v965_v57, %v968_v58  ;;  %v2708_v57 = vld [vmem:[%s2882_s29 + $0x44] sm:$0xff]  }
  0xd0   : > { %v3278_v6 = vsel %vm646_vm2, %v818_v62, %v799_v27  ;;  %v894_v41 = vsel %vm850_vm3, %v890_v21, %v893_v60  ;;  %2474 = vmatmul.mubr.msk.bf16.gmra.mxu1 %vm1000_vm4, %v969_v0  ;;  %v897_v11 = vor.u32 %v895_v9, %v893_v60 }
  0xd1   : > { %v898_v12 = vshll.u32 %v3278_v6, 16  ;;  %2457 = vmatprep.mubr.msk.bf16.mxu0 %vm1000_vm4, %v894_v41  ;;  %v484_v16 = vpop.permute.xlu1 %483 }
  0xd2   : > { %v482_v14 = vpop.permute.xlu0 %481  ;;  %v645_v13 = vsel %vm597_vm1, %v2704_v25, %v484_v16 }
  0xd3   : > { %v900_v5 = vrot.slane %v898_v12, 1  ;;  %v642_v24 = vsel %vm597_vm1, %v2207_v19, %v482_v14  ;;  %v2712_v19 = vld [vmem:[%s2882_s29 + $0x4c] ss:$0 sps:$4 sm:$0x11]  }
  0xd5   : > { %v466_v20 = vpop.permute.xlu1 %465  ;;  %v901_v23 = vsel %vm850_vm3, %v897_v11, %v900_v5 }
  0xd6   : > { %v594_v30 = vpop.permute.xlu0 %593  ;;  %2458 = vmatmul.mubr.msk.bf16.gmra.mxu0 %vm1000_vm4, %v901_v23  ;;  %v618_v1 = vsel %vm597_vm1, %v2199_v42, %v466_v20  ;;  %v1419_v20 = vld [vmem:[%s2882_s29] sm:$0xe] }
  0xd7   : > { %v3291_v31 = vsel %vm646_vm2, %v642_v24, %v594_v30 }
  0xd8   : > { %v972_v35 = vshll.u32 %v3291_v31, 16  ;;  %v970_v44 = vshrl.u32 %v3291_v31, 16 }
  0xd9   : > { %v468_v36 = vpop.permute.xlu1 %467 }
  0xda   : > { %v974_v33 = vrot.slane %v972_v35, 1  ;;  %v596_v43 = vpop.permute.xlu0 %595  ;;  %v621_v0 = vsel %vm597_vm1, %v2708_v57, %v468_v36 }
  0xdb   : > { %v3301_v26 = vsel %vm646_vm2, %v645_v13, %v596_v43 }
  0xdc   : > { %v976_v45 = vshll.u32 %v3301_v26, 16  ;;  %v975_v52 = vor.u32 %v974_v33, %v970_v44  ;;  %v980_v12 = vshrl.u32 %v3301_v26, 16  ;;  %v2336_v33 = vcombine.low %v1419_v20, %v3114_v8  ;;  %v1420_v44 = vld [vmem:[%s2882_s29 + $0x14] sm:$0xe] }
  0xdd   : > { %v769_v51 = vpop.permute.xlu1 %768  ;;  %v2337_v57 = vcombine.low %v1420_v44, %v3182_v49 }
  0xde   : > { %v978_v4 = vrot.slane %v976_v45, 1  ;;  %v578_v58 = vpop.permute.xlu0 %577  ;;  %v833_v61 = vsel %vm597_vm1, %v2709_v48, %v769_v51 }
  0xdf   : > { %v3309_v27 = vsel %vm646_vm2, %v618_v1, %v578_v58 }
  0xe0   : > { %v904_v21 = vshll.u32 %v3309_v27, 16  ;;  %v979_v60 = vsel %vm850_vm3, %v975_v52, %v978_v4  ;;  %v902_v11 = vshrl.u32 %v3309_v27, 16  ;;  %v982_v23 = vor.u32 %v980_v12, %v978_v4 }
  0xe1   : > { %2477 = vmatprep.mubr.msk.bf16.mxu1 %vm1000_vm4, %v979_v60  ;;  %v809_v62 = vpop.permute.xlu1 %808 }
  0xe2   : > { %v906_v2 = vrot.slane %v904_v21, 1  ;;  %v580_v41 = vpop.permute.xlu0 %579  ;;  %v3317_v9 = vsel %vm646_vm2, %v833_v61, %v809_v62  ;;  %v1613_v21 = vrot.slane %v3145_v39, 1 }
  0xe3   : > { %v3321_v16 = vsel %vm646_vm2, %v621_v0, %v580_v41  ;;  %v983_v14 = vshll.u32 %v3317_v9, 16  ;;  %v1421_v0 = vld [vmem:[%s2882_s29 + $0x28] sm:$0xe] }
  0xe4   : > { %v908_v5 = vshll.u32 %v3321_v16, 16  ;;  %v907_v30 = vor.u32 %v906_v2, %v902_v11  ;;  %v912_v45 = vshrl.u32 %v3321_v16, 16  ;;  %v2338_v12 = vcombine.low %v1421_v0, %v3239_v15 }
  0xe5   : > { %v985_v24 = vrot.slane %v983_v14, 1  ;;  %v801_v25 = vpop.permute.xlu1 %800  ;;  %v1615_v14 = vrot.slane %v3161_v54, 1  ;;  %v1620_v15 = vrot.slane %v3222_v56, 1 }
  0xe6   : > { %v910_v32 = vrot.slane %v908_v5, 1  ;;  %v761_v35 = vpop.permute.xlu0 %760  ;;  %v1618_v5 = vrot.slane %v3209_v7, 1 }
  0xe7   : > { %v821_v36 = vsel %vm597_vm1, %v2712_v19, %v761_v35  ;;  %v986_v13 = vsel %vm850_vm3, %v982_v23, %v985_v24  ;;  %v1616_v24 = vsel %vm1611_vm5, %v1613_v21, %v1615_v14  ;;  %v1623_v35 = vrot.slane %v3265_v47, 1 }
  0xe8   : > { %v3332_v42 = vsel %vm646_vm2, %v821_v36, %v801_v25  ;;  %v911_v43 = vsel %vm850_vm3, %v907_v30, %v910_v32  ;;  %2478 = vmatmul.mubr.msk.bf16.gmra.mxu1 %vm1000_vm4, %v986_v13  ;;  %v914_v52 = vor.u32 %v912_v45, %v910_v32  ;;  %v1422_v25 = vld [vmem:[%s2882_s29 + $0x3c] sm:$0xe] }
  0xe9   : > { %v915_v48 = vshll.u32 %v3332_v42, 16  ;;  %2461 = vmatprep.mubr.msk.bf16.mxu0 %vm1000_vm4, %v911_v43  ;;  %2485 = vmatprep.mubr.msk.bf16.mxu1 %vm1000_vm4, %v3133_v28  ;;  %v1532_v51 = vpop.permute.xlu1 %1531  ;;  %v1621_v43 = vsel %vm1611_vm5, %v1618_v5, %v1620_v15 }
  0xea   : > { %v1492_v8 = vpop.permute.xlu0 %1491 }
  0xeb   : > { %v917_v1 = vrot.slane %v915_v48, 1  ;;  %v1549_v4 = vsel %vm597_vm1, %v2336_v33, %v1492_v8  ;;  %v1423_v33 = vld [vmem:[%s2882_s29 + $0x50] sm:$0xe]  ;;  %v1628_v48 = vrot.slane %v3321_v16, 1 }
  0xec   : > { %v1572_v58 = vsel %vm646_vm2, %v1549_v4, %v1532_v51 }
  0xed   : > { %v1612_v60 = vrot.slane %v1572_v58, 1  ;;  %v918_v61 = vsel %vm850_vm3, %v914_v52, %v917_v1  ;;  %v1534_v62 = vpop.permute.xlu1 %1533  ;;  %v1424_v52 = vld [vmem:[%s2882_s29 + $0x64] sm:$0xe]  ;;  %v1633_v58 = vrot.slane %v3123_v17, 1 }
  0xee   : > { %v1494_v2 = vpop.permute.xlu0 %1493  ;;  %2462 = vmatmul.mubr.msk.bf16.gmra.mxu0 %vm1000_vm4, %v918_v61  ;;  %v1425_v61 = vld [vmem:[%s2882_s29 + $0x78] sm:$0xe] }
  0xef   : > { %v1552_v28 = vsel %vm597_vm1, %v2337_v57, %v1494_v2  ;;  %v1614_v41 = vsel %vm1611_vm5, %v1612_v60, %v1613_v21 }
  0xf0   : > { %v1574_v49 = vsel %vm646_vm2, %v1552_v28, %v1534_v62  ;;  %2521 = vmatprep.mubr.msk.bf16.mxu0 %vm1000_vm4, %v1614_v41  ;;  %2486 = vmatmul.mubr.msk.bf16.vlgmr.msra.gmra.mxu1 %vm1000_vm4, %v3145_v39  ;;  %v1638_v28 = vrot.slane %v3189_v18, 1 }
  0xf1   : > { %2489 = vmatprep.mubr.msk.bf16.mxu1 %vm1000_vm4, %v3197_v29  ;;  %v1617_v19 = vrot.slane %v1574_v49, 1  ;;  %v1536_v23 = vpop.permute.xlu1 %1535  ;;  %v2339_v29 = vcombine.low %v1422_v25, %v3295_v34  ;;  %v1625_v34 = vrot.slane %v3278_v6, 1  ;;  %v2341_v6 = vcombine.low %v1424_v52, %v3158_v53 }
  0xf2   : > { %v1496_v11 = vpop.permute.xlu0 %1495  ;;  %v1648_v25 = vrot.slane %v3301_v26, 1 }
  0xf3   : > { %v1555_v20 = vsel %vm597_vm1, %v2338_v12, %v1496_v11  ;;  %v1619_v39 = vsel %vm1611_vm5, %v1617_v19, %v1618_v5  ;;  %v1626_v1 = vsel %vm1611_vm5, %v1623_v35, %v1625_v34  ;;  %v1426_v12 = vld [vmem:[%s2882_s29 + $0x8c] sm:$0xe]  ;;  %v1643_v5 = vrot.slane %v3245_v22, 1 }
  0xf4   : > { %v1576_v54 = vsel %vm646_vm2, %v1555_v20, %v1536_v23 }
  0xf5   : > { %v1622_v32 = vrot.slane %v1576_v54, 1  ;;  %v1538_v13 = vpop.permute.xlu1 %1537 }
  0xf6   : > { %2522 = vmatmul.mubr.msk.bf16.vlgmr.msra.gmra.mxu0 %vm1000_vm4, %v1616_v24  ;;  %v1498_v30 = vpop.permute.xlu0 %1497 }
  0xf7   : > { %2525 = vmatprep.mubr.msk.bf16.mxu0 %vm1000_vm4, %v1619_v39  ;;  %v1558_v36 = vsel %vm597_vm1, %v2339_v29, %v1498_v30 }
  0xf8   : > { %2490 = vmatmul.mubr.msk.bf16.gmra.mxu1 %vm1000_vm4, %v3209_v7  ;;  %v1624_v7 = vsel %vm1611_vm5, %v1622_v32, %v1623_v35  ;;  %v1578_v56 = vsel %vm646_vm2, %v1558_v36, %v1538_v13 }
  0xf9   : > { %2493 = vmatprep.mubr.msk.bf16.mxu1 %vm1000_vm4, %v3253_v38  ;;  %v2340_v38 = vcombine.low %v1423_v33, %v3089_v50  ;;  %v1627_v45 = vrot.slane %v1578_v56, 1  ;;  %v1540_v8 = vpop.permute.xlu1 %1539 }
  0xfa   : > { %v1500_v44 = vpop.permute.xlu0 %1499 }
  0xfb   : > { %v1561_v51 = vsel %vm597_vm1, %v2340_v38, %v1500_v44  ;;  %v1629_v50 = vsel %vm1611_vm5, %v1627_v45, %v1628_v48 }
  0xfd   : > { %v1542_v60 = vpop.permute.xlu1 %1541 }
  0xfe   : > { %2526 = vmatmul.mubr.msk.bf16.gmra.mxu0 %vm1000_vm4, %v1621_v43  ;;  %v1502_v4 = vpop.permute.xlu0 %1501 }
  0xff   : > { %2529 = vmatprep.mubr.msk.bf16.mxu0 %vm1000_vm4, %v1624_v7  ;;  %v1564_v21 = vsel %vm597_vm1, %v2341_v6, %v1502_v4 }
 0x100   : > { %2494 = vmatmul.mubr.msk.bf16.gmra.mxu1 %vm1000_vm4, %v3265_v47  ;;  %v1580_v47 = vsel %vm646_vm2, %v1561_v51, %v1540_v8 }
 0x101   : > { %2497 = vmatprep.mubr.msk.bf16.mxu1 %vm1000_vm4, %v3309_v27  ;;  %v1630_v27 = vrot.slane %v3332_v42, 1  ;;  %v1632_v57 = vrot.slane %v1580_v47, 1  ;;  %v1635_v42 = vrot.slane %v3141_v37, 1  ;;  %v1544_v49 = vpop.permute.xlu1 %1543  ;;  %v2343_v37 = vcombine.low %v1426_v12, %v3275_v3 }
 0x102   : > { %v1504_v0 = vpop.permute.xlu0 %1503 }
 0x103   : > { %v1631_v62 = vsel %vm1611_vm5, %v1628_v48, %v1630_v27  ;;  %v1634_v53 = vsel %vm1611_vm5, %v1632_v57, %v1633_v58  ;;  %v1636_v14 = vsel %vm1611_vm5, %v1633_v58, %v1635_v42  ;;  %v3505_v42 = vld [vmem:[%s3691_s2] ss:$0 sm:$0xff] }
 0x105   : > { %v1546_v23 = vpop.permute.xlu1 %1545 }
 0x106   : > { %2530 = vmatmul.mubr.msk.bf16.gmra.mxu0 %vm1000_vm4, %v1626_v1  ;;  %v1506_v19 = vpop.permute.xlu0 %1505 }
 0x107   : > { %2533 = vmatprep.mubr.msk.bf16.mxu0 %vm1000_vm4, %v1629_v50  ;;  %v1570_v20 = vsel %vm597_vm1, %v2343_v37, %v1506_v19 }
 0x108   : > { %2498 = vmatmul.mubr.msk.bf16.gmra.mxu1 %vm1000_vm4, %v3321_v16  ;;  %v1582_v16 = vsel %vm646_vm2, %v1564_v21, %v1542_v60 }
 0x109   : > { %2501 = vmatprep.mubr.msk.bf16.mxu1 %vm1000_vm4, %v3104_v59  ;;  %v2342_v59 = vcombine.low %v1425_v61, %v3219_v55  ;;  %v1637_v2 = vrot.slane %v1582_v16, 1 }
 0x10b   : > { %v1567_v41 = vsel %vm597_vm1, %v2342_v59, %v1504_v0  ;;  %v1639_v55 = vsel %vm1611_vm5, %v1637_v2, %v1638_v28 }
 0x10e   : > { %2534 = vmatmul.mubr.msk.bf16.gmra.mxu0 %vm1000_vm4, %v1631_v62 }
 0x10f   : > { %2537 = vmatprep.mubr.msk.bf16.mxu0 %vm1000_vm4, %v1634_v53 }
 0x110   : > { %2502 = vmatmul.mubr.msk.bf16.gmra.mxu1 %vm1000_vm4, %v3123_v17  ;;  %v1584_v17 = vsel %vm646_vm2, %v1567_v41, %v1544_v49 }
 0x111   : > { %2505 = vmatprep.mubr.msk.bf16.mxu1 %vm1000_vm4, %v3178_v63  ;;  %v1640_v63 = vrot.slane %v3205_v40, 1  ;;  %v1642_v11 = vrot.slane %v1584_v17, 1  ;;  %v1645_v40 = vrot.slane %v3261_v46, 1 }
 0x113   : > { %v1641_v24 = vsel %vm1611_vm5, %v1638_v28, %v1640_v63  ;;  %v1644_v3 = vsel %vm1611_vm5, %v1642_v11, %v1643_v5  ;;  %v1646_v39 = vsel %vm1611_vm5, %v1643_v5, %v1645_v40 }
 0x116   : > { %2538 = vmatmul.mubr.msk.bf16.gmra.mxu0 %vm1000_vm4, %v1636_v14 }
 0x117   : > { %2541 = vmatprep.mubr.msk.bf16.mxu0 %vm1000_vm4, %v1639_v55 }
 0x118   : > { %2506 = vmatmul.mubr.msk.bf16.gmra.mxu1 %vm1000_vm4, %v3189_v18  ;;  %v1586_v18 = vsel %vm646_vm2, %v1570_v20, %v1546_v23 }
 0x119   : > { %2509 = vmatprep.mubr.msk.bf16.mxu1 %vm1000_vm4, %v3235_v10  ;;  %v1647_v10 = vrot.slane %v1586_v18, 1 }
 0x11b   : > { %v1649_v54 = vsel %vm1611_vm5, %v1647_v10, %v1648_v25 }
 0x11e   : > { %2542 = vmatmul.mubr.msk.bf16.gmra.mxu0 %vm1000_vm4, %v1641_v24 }
 0x11f   : > { %2545 = vmatprep.mubr.msk.bf16.mxu0 %vm1000_vm4, %v1644_v3 }
 0x120   : > { %2510 = vmatmul.mubr.msk.bf16.gmra.mxu1 %vm1000_vm4, %v3245_v22  ;;  %v1650_v22 = vrot.slane %v3317_v9, 1 }
 0x121   : > { %2513 = vmatprep.mubr.msk.bf16.mxu1 %vm1000_vm4, %v3291_v31 }
 0x122   : > { %v1651_v46 = vsel %vm1611_vm5, %v1648_v25, %v1650_v22 }
 0x126   : > { %2546 = vmatmul.mubr.msk.bf16.gmra.mxu0 %vm1000_vm4, %v1646_v39 }
 0x127   : > { %2549 = vmatprep.mubr.msk.bf16.mxu0 %vm1000_vm4, %v1649_v54 }
 0x128   : > { %2514 = vmatmul.mubr.msk.bf16.gmra.mxu1 %vm1000_vm4, %v3301_v26 }
 0x12e   : > { %2550 = vmatmul.mubr.msk.bf16.gmra.mxu0 %vm1000_vm4, %v1651_v46 }
 0x160   : > { %v3451_v31 = vpop.f32.mrf.mxu1 }
 0x162   : > { %v3453_v29 = vpop.f32.mrf.mxu1 }
 0x164   : > { %v3455_v30 = vpop.f32.mrf.mxu1 }
 0x166   : > { %v2451_v15 = vpop.f32.mrf.mxu0  ;;  %v3457_v35 = vpop.f32.mrf.mxu1 }
 0x168   : > { %v1087_v32 = vpop.f32.mrf.mxu0 }
 0x16a   : > { %v2452_v36 = vpop.f32.mrf.mxu0 }
 0x16c   : > { %v1090_v26 = vpop.f32.mrf.mxu0 }
 0x178   : > { %v3459_v13 = vpop.f32.mrf.mxu1 }
 0x17a   : > { %v3461_v33 = vpop.f32.mrf.mxu1 }
 0x17c   : > { %v3463_v43 = vpop.f32.mrf.mxu1 }
 0x17e   : > { %v2455_v9 = vpop.f32.mrf.mxu0  ;;  %v3465_v56 = vpop.f32.mrf.mxu1 }
 0x180   : > { %v1103_v7 = vpop.f32.mrf.mxu0 }
 0x182   : > { %v2456_v38 = vpop.f32.mrf.mxu0 }
 0x184   : > { %v3469_v44 = vpop.f32.mrf.mxu0 }
 0x190   : > { %v3467_v34 = vpop.f32.mrf.mxu1 }
 0x192   : > { %v3471_v45 = vpop.f32.mrf.mxu1 }
 0x194   : > { %v3475_v51 = vpop.f32.mrf.mxu1 }
 0x196   : > { %v3473_v48 = vpop.f32.mrf.mxu0  ;;  %v3479_v52 = vpop.f32.mrf.mxu1 }
 0x198   : > { %v3477_v8 = vpop.f32.mrf.mxu0 }
 0x19a   : > { %v3481_v1 = vpop.f32.mrf.mxu0 }
 0x19c   : > { %v3487_v6 = vpop.f32.mrf.mxu0 }
 0x1a8   : > { %v3483_v50 = vpop.f32.mrf.mxu1 }
 0x1aa   : > { %v3485_v47 = vpop.f32.mrf.mxu1 }
 0x1ac   : > { %v3489_v27 = vpop.f32.mrf.mxu1 }
 0x1ae   : > { %v3491_v4 = vpop.f32.mrf.mxu0  ;;  %v3493_v57 = vpop.f32.mrf.mxu1 }
 0x1b0   : > { %v3495_v58 = vpop.f32.mrf.mxu0  ;;  %v2487_v21 = vpop.f32.mrf.mxu1 }
 0x1b1   : > { %v1301_v16 = vadd.f32 %v2487_v21, %v2451_v15 }
 0x1b2   : > { %v3497_v60 = vpop.f32.mrf.mxu0  ;;  %v1292_v61 = vpop.f32.mrf.mxu1 }
 0x1b3   : > { %v1293_v2 = vadd.f32 %v1292_v61, %v1087_v32 }
 0x1b4   : > { %v3499_v62 = vpop.f32.mrf.mxu0  ;;  %v2488_v53 = vpop.f32.mrf.mxu1 }
 0x1b5   : > { %v1304_v12 = vadd.f32 %v2488_v53, %v2452_v36 }
 0x1b6   : > { %v2523_v59 = vpop.f32.mrf.mxu0  ;;  %v1295_v0 = vpop.f32.mrf.mxu1 }
 0x1b7   : > { %v1879_v28 = vadd.f32 %v2523_v59, %v1301_v16  ;;  %v1296_v19 = vadd.f32 %v1295_v0, %v1090_v26 }
 0x1b8   : > { %v1750_v41 = vpop.f32.mrf.mxu0  ;;  %v2491_v49 = vpop.f32.mrf.mxu1 }
 0x1b9   : > { %v1918_v14 = vadd.f32 %v3505_v42, %v1879_v28  ;;  %v1877_v55 = vadd.f32 %v1750_v41, %v1293_v2  ;;  %v1317_v3 = vadd.f32 %v2491_v49, %v2455_v9 }
 0x1ba   : > { %v2524_v17 = vpop.f32.mrf.mxu0  ;;  %v1308_v37 = vpop.f32.mrf.mxu1 }
 0x1bb   : > { %v1950_v63 = vmax.f32 %v1918_v14, 0.0  ;;  %v1916_v11 = vadd.f32 %v3505_v42, %v1877_v55  ;;  %v1880_v5 = vadd.f32 %v2524_v17, %v1304_v12  ;;  %v1309_v54 = vadd.f32 %v1308_v37, %v1103_v7 }
 0x1bc   : > { %v1753_v20 = vpop.f32.mrf.mxu0  ;;  %v2492_v23 = vpop.f32.mrf.mxu1 }
 0x1bd   : > { %1983 = vst.msk [vmem:[%s3511_s5 + $0x10] sm:$0xff] %vm1980_vm6, %v1950_v63  ;;  %v1948_v24 = vmax.f32 %v1916_v11, 0.0  ;;  %v1919_v18 = vadd.f32 %v3505_v42, %v1880_v5  ;;  %v1878_v40 = vadd.f32 %v1753_v20, %v1296_v19  ;;  %v1320_v26 = vadd.f32 %v2492_v23, %v2456_v38 }
 0x1be   : > { %v2527_v10 = vpop.f32.mrf.mxu0  ;;  %v1311_v25 = vpop.f32.mrf.mxu1 }
 0x1bf   : > { %1981 = vst.msk [vmem:[%s3511_s5] sm:$0xff] %vm1980_vm6, %v1948_v24  ;;  %v1951_v39 = vmax.f32 %v1919_v18, 0.0  ;;  %v1917_v22 = vadd.f32 %v3505_v42, %v1878_v40  ;;  %v1883_v46 = vadd.f32 %v2527_v10, %v1317_v3  ;;  %v1312_v7 = vadd.f32 %v1311_v25, %v3469_v44 }
 0x1c0   : > { %v1766_v15 = vpop.f32.mrf.mxu0  ;;  %v2495_v32 = vpop.f32.mrf.mxu1 }
 0x1c1   : > { %1984 = vst.msk [vmem:[%s3511_s5 + $0x18] sm:$0xff] %vm1980_vm6, %v1951_v39  ;;  %v1949_v36 = vmax.f32 %v1917_v22, 0.0  ;;  %v1922_v9 = vadd.f32 %v3505_v42, %v1883_v46  ;;  %v1881_v21 = vadd.f32 %v1766_v15, %v1309_v54  ;;  %v1333_v41 = vadd.f32 %v2495_v32, %v3473_v48 }
 0x1c2   : > { %v2528_v61 = vpop.f32.mrf.mxu0  ;;  %v1324_v53 = vpop.f32.mrf.mxu1 }
 0x1c3   : > { %1982 = vst.msk [vmem:[%s3511_s5 + $0x8] sm:$0xff] %vm1980_vm6, %v1949_v36  ;;  %v1954_v16 = vmax.f32 %v1922_v9, 0.0  ;;  %v1920_v59 = vadd.f32 %v3505_v42, %v1881_v21  ;;  %v1884_v0 = vadd.f32 %v2528_v61, %v1320_v26  ;;  %v1325_v17 = vadd.f32 %v1324_v53, %v3477_v8 }
 0x1c4   : > { %v1769_v2 = vpop.f32.mrf.mxu0  ;;  %v2496_v28 = vpop.f32.mrf.mxu1 }
 0x1c5   : > { %1987 = vst.msk [vmem:[%s3511_s5 + $0x30] sm:$0xff] %vm1980_vm6, %v1954_v16  ;;  %v1952_v38 = vmax.f32 %v1920_v59, 0.0  ;;  %v1923_v49 = vadd.f32 %v3505_v42, %v1884_v0  ;;  %v1882_v12 = vadd.f32 %v1769_v2, %v1312_v7  ;;  %v1336_v5 = vadd.f32 %v2496_v28, %v3481_v1 }
 0x1c6   : > { %v2531_v14 = vpop.f32.mrf.mxu0  ;;  %v1327_v55 = vpop.f32.mrf.mxu1 }
 0x1c7   : > { %1985 = vst.msk [vmem:[%s3511_s5 + $0x20] sm:$0xff] %vm1980_vm6, %v1952_v38  ;;  %v1955_v44 = vmax.f32 %v1923_v49, 0.0  ;;  %v1921_v37 = vadd.f32 %v3505_v42, %v1882_v12  ;;  %v1887_v63 = vadd.f32 %v2531_v14, %v1333_v41  ;;  %v1328_v18 = vadd.f32 %v1327_v55, %v3487_v6 }
 0x1c8   : > { %v1782_v19 = vpop.f32.mrf.mxu0  ;;  %v2499_v11 = vpop.f32.mrf.mxu1 }
 0x1c9   : > { %1988 = vst.msk [vmem:[%s3511_s5 + $0x38] sm:$0xff] %vm1980_vm6, %v1955_v44  ;;  %v1953_v48 = vmax.f32 %v1921_v37, 0.0  ;;  %v1926_v20 = vadd.f32 %v3505_v42, %v1887_v63  ;;  %v1885_v23 = vadd.f32 %v1782_v19, %v1325_v17  ;;  %v1349_v54 = vadd.f32 %v2499_v11, %v3491_v4 }
 0x1ca   : > { %v2532_v24 = vpop.f32.mrf.mxu0  ;;  %v1340_v3 = vpop.f32.mrf.mxu1 }
 0x1cb   : > { %1986 = vst.msk [vmem:[%s3511_s5 + $0x28] sm:$0xff] %vm1980_vm6, %v1953_v48  ;;  %v1958_v8 = vmax.f32 %v1926_v20, 0.0  ;;  %v1924_v40 = vadd.f32 %v3505_v42, %v1885_v23  ;;  %v1888_v10 = vadd.f32 %v2532_v24, %v1336_v5  ;;  %v1341_v36 = vadd.f32 %v1340_v3, %v3495_v58 }
 0x1cc   : > { %v1785_v25 = vpop.f32.mrf.mxu0  ;;  %v2500_v39 = vpop.f32.mrf.mxu1 }
 0x1cd   : > { %1991 = vst.msk [vmem:[%s3511_s5 + $0x50] sm:$0xff] %vm1980_vm6, %v1958_v8  ;;  %v1956_v1 = vmax.f32 %v1924_v40, 0.0  ;;  %v1927_v22 = vadd.f32 %v3505_v42, %v1888_v10  ;;  %v1886_v46 = vadd.f32 %v1785_v25, %v1328_v18  ;;  %v1352_v53 = vadd.f32 %v2500_v39, %v3497_v60 }
 0x1ce   : > { %v2535_v15 = vpop.f32.mrf.mxu0  ;;  %v1343_v32 = vpop.f32.mrf.mxu1 }
 0x1cf   : > { %1989 = vst.msk [vmem:[%s3511_s5 + $0x40] sm:$0xff] %vm1980_vm6, %v1956_v1  ;;  %v1959_v6 = vmax.f32 %v1927_v22, 0.0  ;;  %v1925_v26 = vadd.f32 %v3505_v42, %v1886_v46  ;;  %v1891_v9 = vadd.f32 %v2535_v15, %v1349_v54  ;;  %v1344_v2 = vadd.f32 %v1343_v32, %v3499_v62 }
 0x1d0   : > { %v1798_v21 = vpop.f32.mrf.mxu0  ;;  %v2503_v61 = vpop.f32.mrf.mxu1 }
 0x1d1   : > { %1992 = vst.msk [vmem:[%s3511_s5 + $0x58] sm:$0xff] %vm1980_vm6, %v1959_v6  ;;  %v1957_v4 = vmax.f32 %v1925_v26, 0.0  ;;  %v1930_v16 = vadd.f32 %v3505_v42, %v1891_v9  ;;  %v1889_v7 = vadd.f32 %v1798_v21, %v1341_v36  ;;  %v1365_v12 = vadd.f32 %v2503_v61, %v3451_v31 }
 0x1d2   : > { %v2536_v59 = vpop.f32.mrf.mxu0  ;;  %v1356_v0 = vpop.f32.mrf.mxu1 }
 0x1d3   : > { %1990 = vst.msk [vmem:[%s3511_s5 + $0x48] sm:$0xff] %vm1980_vm6, %v1957_v4  ;;  %v1962_v58 = vmax.f32 %v1930_v16, 0.0  ;;  %v1928_v28 = vadd.f32 %v3505_v42, %v1889_v7  ;;  %v1892_v38 = vadd.f32 %v2536_v59, %v1352_v53  ;;  %v1357_v37 = vadd.f32 %v1356_v0, %v3453_v29 }
 0x1d4   : > { %v1801_v41 = vpop.f32.mrf.mxu0  ;;  %v2504_v49 = vpop.f32.mrf.mxu1 }
 0x1d5   : > { %1995 = vst.msk [vmem:[%s3511_s5 + $0x70] sm:$0xff] %vm1980_vm6, %v1962_v58  ;;  %v1960_v60 = vmax.f32 %v1928_v28, 0.0  ;;  %v1931_v14 = vadd.f32 %v3505_v42, %v1892_v38  ;;  %v1890_v55 = vadd.f32 %v1801_v41, %v1344_v2  ;;  %v1368_v5 = vadd.f32 %v2504_v49, %v3455_v30 }
 0x1d6   : > { %v2539_v44 = vpop.f32.mrf.mxu0  ;;  %v1359_v17 = vpop.f32.mrf.mxu1 }
 0x1d7   : > { %1993 = vst.msk [vmem:[%s3511_s5 + $0x60] sm:$0xff] %vm1980_vm6, %v1960_v60  ;;  %v1963_v62 = vmax.f32 %v1931_v14, 0.0  ;;  %v1929_v63 = vadd.f32 %v3505_v42, %v1890_v55  ;;  %v1895_v19 = vadd.f32 %v2539_v44, %v1365_v12  ;;  %v1360_v8 = vadd.f32 %v1359_v17, %v3457_v35 }
 0x1d8   : > { %v1814_v11 = vpop.f32.mrf.mxu0  ;;  %v2507_v48 = vpop.f32.mrf.mxu1 }
 0x1d9   : > { %1996 = vst.msk [vmem:[%s3511_s5 + $0x78] sm:$0xff] %vm1980_vm6, %v1963_v62  ;;  %v1961_v31 = vmax.f32 %v1929_v63, 0.0  ;;  %v1934_v20 = vadd.f32 %v3505_v42, %v1895_v19  ;;  %v1893_v23 = vadd.f32 %v1814_v11, %v1357_v37  ;;  %v1381_v39 = vadd.f32 %v2507_v48, %v3459_v13 }
 0x1da   : > { %v2540_v24 = vpop.f32.mrf.mxu0  ;;  %v1372_v3 = vpop.f32.mrf.mxu1 }
 0x1db   : > { %1994 = vst.msk [vmem:[%s3511_s5 + $0x68] sm:$0xff] %vm1980_vm6, %v1961_v31  ;;  %v1966_v29 = vmax.f32 %v1934_v20, 0.0  ;;  %v1932_v18 = vadd.f32 %v3505_v42, %v1893_v23  ;;  %v1896_v40 = vadd.f32 %v2540_v24, %v1368_v5  ;;  %v1373_v15 = vadd.f32 %v1372_v3, %v3461_v33 }
 0x1dc   : > { %v1817_v10 = vpop.f32.mrf.mxu0  ;;  %v2508_v25 = vpop.f32.mrf.mxu1 }
 0x1dd   : > { %1999 = vst.msk [vmem:[%s3511_s5 + $0x90] sm:$0xff] %vm1980_vm6, %v1966_v29  ;;  %v1964_v30 = vmax.f32 %v1932_v18, 0.0  ;;  %v1935_v1 = vadd.f32 %v3505_v42, %v1896_v40  ;;  %v1894_v54 = vadd.f32 %v1817_v10, %v1360_v8  ;;  %v1384_v9 = vadd.f32 %v2508_v25, %v3463_v43 }
 0x1de   : > { %v2543_v22 = vpop.f32.mrf.mxu0  ;;  %v1375_v46 = vpop.f32.mrf.mxu1 }
 0x1df   : > { %1997 = vst.msk [vmem:[%s3511_s5 + $0x80] sm:$0xff] %vm1980_vm6, %v1964_v30  ;;  %v1967_v35 = vmax.f32 %v1935_v1, 0.0  ;;  %v1933_v32 = vadd.f32 %v3505_v42, %v1894_v54  ;;  %v1899_v6 = vadd.f32 %v2543_v22, %v1381_v39  ;;  %v1376_v16 = vadd.f32 %v1375_v46, %v3465_v56 }
 0x1e0   : > { %v1830_v36 = vpop.f32.mrf.mxu0  ;;  %v2511_v26 = vpop.f32.mrf.mxu1 }
 0x1e1   : > { %2000 = vst.msk [vmem:[%s3511_s5 + $0x98] sm:$0xff] %vm1980_vm6, %v1967_v35  ;;  %v1965_v13 = vmax.f32 %v1933_v32, 0.0  ;;  %v1938_v21 = vadd.f32 %v3505_v42, %v1899_v6  ;;  %v1897_v61 = vadd.f32 %v1830_v36, %v1373_v15  ;;  %v1397_v2 = vadd.f32 %v2511_v26, %v3467_v34 }
 0x1e2   : > { %v2544_v4 = vpop.f32.mrf.mxu0  ;;  %v1388_v53 = vpop.f32.mrf.mxu1 }
 0x1e3   : > { %1998 = vst.msk [vmem:[%s3511_s5 + $0x88] sm:$0xff] %vm1980_vm6, %v1965_v13  ;;  %v1970_v33 = vmax.f32 %v1938_v21, 0.0  ;;  %v1936_v7 = vadd.f32 %v3505_v42, %v1897_v61  ;;  %v1900_v59 = vadd.f32 %v2544_v4, %v1384_v9  ;;  %v1389_v60 = vadd.f32 %v1388_v53, %v3471_v45 }
 0x1e4   : > { %v1833_v0 = vpop.f32.mrf.mxu0  ;;  %v2512_v58 = vpop.f32.mrf.mxu1 }
 0x1e5   : > { %2003 = vst.msk [vmem:[%s3511_s5 + $0xb0] sm:$0xff] %vm1980_vm6, %v1970_v33  ;;  %v1968_v43 = vmax.f32 %v1936_v7, 0.0  ;;  %v1939_v28 = vadd.f32 %v3505_v42, %v1900_v59  ;;  %v1898_v38 = vadd.f32 %v1833_v0, %v1376_v16  ;;  %v1400_v17 = vadd.f32 %v2512_v58, %v3475_v51 }
 0x1e6   : > { %v2547_v41 = vpop.f32.mrf.mxu0  ;;  %v1391_v49 = vpop.f32.mrf.mxu1 }
 0x1e7   : > { %2001 = vst.msk [vmem:[%s3511_s5 + $0xa0] sm:$0xff] %vm1980_vm6, %v1968_v43  ;;  %v1971_v56 = vmax.f32 %v1939_v28, 0.0  ;;  %v1937_v12 = vadd.f32 %v3505_v42, %v1898_v38  ;;  %v1903_v14 = vadd.f32 %v2547_v41, %v1397_v2  ;;  %v1392_v11 = vadd.f32 %v1391_v49, %v3479_v52 }
 0x1e8   : > { %v1846_v55 = vpop.f32.mrf.mxu0  ;;  %v2515_v44 = vpop.f32.mrf.mxu1 }
 0x1e9   : > { %2004 = vst.msk [vmem:[%s3511_s5 + $0xb8] sm:$0xff] %vm1980_vm6, %v1971_v56  ;;  %v1969_v34 = vmax.f32 %v1937_v12, 0.0  ;;  %v1942_v62 = vadd.f32 %v3505_v42, %v1903_v14  ;;  %v1901_v37 = vadd.f32 %v1846_v55, %v1389_v60  ;;  %v1413_v23 = vadd.f32 %v2515_v44, %v3483_v50 }
 0x1ea   : > { %v2548_v63 = vpop.f32.mrf.mxu0  ;;  %v1404_v19 = vpop.f32.mrf.mxu1 }
 0x1eb   : > { %2002 = vst.msk [vmem:[%s3511_s5 + $0xa8] sm:$0xff] %vm1980_vm6, %v1969_v34  ;;  %v1974_v45 = vmax.f32 %v1942_v62, 0.0  ;;  %v1940_v48 = vadd.f32 %v3505_v42, %v1901_v37  ;;  %v1904_v31 = vadd.f32 %v2548_v63, %v1400_v17  ;;  %v1405_v52 = vadd.f32 %v1404_v19, %v3485_v47 }
 0x1ec   : > { %v1849_v5 = vpop.f32.mrf.mxu0  ;;  %v2516_v20 = vpop.f32.mrf.mxu1 }
 0x1ed   : > { %2007 = vst.msk [vmem:[%s3511_s5 + $0xd0] sm:$0xff] %vm1980_vm6, %v1974_v45  ;;  %v1972_v51 = vmax.f32 %v1940_v48, 0.0  ;;  %v1943_v24 = vadd.f32 %v3505_v42, %v1904_v31  ;;  %v1902_v3 = vadd.f32 %v1849_v5, %v1392_v11  ;;  %v1416_v30 = vadd.f32 %v2516_v20, %v3489_v27 }
 0x1ee   : > { %v2551_v29 = vpop.f32.mrf.mxu0  ;;  %v1407_v10 = vpop.f32.mrf.mxu1 }
 0x1ef   : > { %2005 = vst.msk [vmem:[%s3511_s5 + $0xc0] sm:$0xff] %vm1980_vm6, %v1972_v51  ;;  %v1975_v8 = vmax.f32 %v1943_v24, 0.0  ;;  %v1941_v18 = vadd.f32 %v3505_v42, %v1902_v3  ;;  %v1907_v40 = vadd.f32 %v2551_v29, %v1413_v23  ;;  %v1408_v22 = vadd.f32 %v1407_v10, %v3493_v57 }
 0x1f0   : > { %v1862_v25 = vpop.f32.mrf.mxu0 }
 0x1f1   : > { %2008 = vst.msk [vmem:[%s3511_s5 + $0xd8] sm:$0xff] %vm1980_vm6, %v1975_v8  ;;  %v1973_v50 = vmax.f32 %v1941_v18, 0.0  ;;  %v1946_v39 = vadd.f32 %v3505_v42, %v1907_v40  ;;  %v1905_v1 = vadd.f32 %v1862_v25, %v1405_v52 }
 0x1f2   : > { %v2552_v54 = vpop.f32.mrf.mxu0 }
 0x1f3   : > { %2006 = vst.msk [vmem:[%s3511_s5 + $0xc8] sm:$0xff] %vm1980_vm6, %v1973_v50  ;;  %v1978_v47 = vmax.f32 %v1946_v39, 0.0  ;;  %v1944_v46 = vadd.f32 %v3505_v42, %v1905_v1  ;;  %v1908_v35 = vadd.f32 %v2552_v54, %v1416_v30 }
 0x1f4   : > { %v1865_v15 = vpop.f32.mrf.mxu0 }
 0x1f5   : > { %2011 = vst.msk [vmem:[%s3511_s5 + $0xf0] sm:$0xff] %vm1980_vm6, %v1978_v47  ;;  %v1976_v27 = vmax.f32 %v1944_v46, 0.0  ;;  %v1947_v32 = vadd.f32 %v3505_v42, %v1908_v35  ;;  %v1906_v6 = vadd.f32 %v1865_v15, %v1408_v22 }
 0x1f7   : > { %2009 = vst.msk [vmem:[%s3511_s5 + $0xe0] sm:$0xff] %vm1980_vm6, %v1976_v27  ;;  %v1979_v36 = vmax.f32 %v1947_v32, 0.0  ;;  %v1945_v57 = vadd.f32 %v3505_v42, %v1906_v6 }
 0x1f9   : > { %2012 = vst.msk [vmem:[%s3511_s5 + $0xf8] sm:$0xff] %vm1980_vm6, %v1979_v36  ;;  %v1977_v26 = vmax.f32 %v1945_v57, 0.0 }
 0x1fb   : > { %2010 = vst.msk [vmem:[%s3511_s5 + $0xe8] sm:$0xff] %vm1980_vm6, %v1977_v26 }
 0x1fc   : > { %2734 = shalt.err (!%p2731_p3)
}
 0x1fd   : > { %s2735_s23 = scalar_lea.hbm %s3633_s10, 4096  ;;  %s2739_s28 = scalar_lea.hbm %s3692_s3, 8192 }
 0x1fe   : > { %p2736_p5 = scmp.ne.s32.totalorder %s3633_s10, %s2735_s23  ;;  %p2740_p9 = scmp.lt.s32.totalorder %s3633_s10, %s3692_s3 }
 0x1ff   : > { %p2741_p10 = scmp.lt.s32.totalorder %s2739_s28, %s2735_s23 }
 0x200   : > { %p2737_p6 = pnand %p2736_p5, %p2863_p4 }
 0x201   : > { %p2742_p11 = por %p2741_p10, %p2740_p9 }
 0x202   : > { %p2738_p7 = pneg %p2737_p6 }
 0x204   : > { %p2743_p12 = pnand %p2742_p11, %p2738_p7 }
 0x206   : > { %2746 = shalt.err (!%p2743_p12)
}
 0x207   : > { %s2802_s5 = smov 128  }
 0x208   : > { %2561 = dma.vmem_to_hbm [thread:$0]  (%p2863_p4), %s3637_s7, 4096, %s3633_s10, %s3643_s15, %s2802_s5, %s2802_s5, %s2800_s4  }
 0x209 PF: > { %p2567_p13 = scmp.ge.s32.totalorder %s2797_s17, 2  ;;  %s2045_s6 = sand.u32 1, %s2777_s12  }
 0x20a   : > { %s2046_s8 = scalar_lea.sflag [#allocation3], %s2045_s6 }
 0x20b   : > { %p2564_p0 = pnand %p2567_p13, %p2870_p8 }
 0x20d   : > { %p2565_p1 = pneg %p2564_p0 }
 0x20f   : > { %2772 = dma.done.wait (%p2565_p1), %s2046_s8, 4096  }
 0x210   : > { %2774 = vsyncadd (%p2565_p1), %s2046_s8, 4294963200  ;;  %s16_s17 = sadd.s32 1, %s2797_s17   ;;  %s3695_s12 = smov %s2781_s13 }
 0x211   : > { %p13_p2 = scmp.ge.s32.totalorder %s16_s17, 4   ;;  %s3696_s13 = smov %s2785_s14 }
 0x212   : > { %s3697_s14 = smov %s2876_s25  ;;  %s3698_s15 = smov %s2793_s16 }
 0x213   : > { %s3699_s16 = smov %s3701_s20  ;;  %15 = sbr.rel (!%p13_p2) target bundleno = 4 (0x4), region = 72 }
 0x218   :  { %2051 = vsyncpa [#allocation3], 1 }
 0x219   :  { %2053 = vsyncpa [#allocation3 + $0x1], 1 }

</bundles_post_ra>
